<compile_context>
chip_gen: v7x
topology: tpu7x:2x2x1
jax: 0.10.0
libtpu: 0.0.40
codegen_flags: <defaults>
</compile_context>

<pallas_src>
import numpy as np
import jax
import jax.numpy as jnp
from jax import lax
from jax.experimental import pallas as pl
from jax.experimental.pallas import tpu as pltpu

# Module hyper-parameters (from LOTTO_CNN.__init__ defaults).
NUM_ROWS, NUM_COLS = 5, 6
C1, C2 = 32, 64
H1, W1 = NUM_ROWS - 1, NUM_COLS - 1      # 4, 5  (after conv1, 2x2 valid)
H2, W2 = H1 - 1, W1 - 1                  # 3, 4  (after conv2, 2x2 valid)
HIDDEN = 128
OUT = 6
FLAT = C2 * H2 * W2                      # 768
IN_FLAT = NUM_ROWS * NUM_COLS            # 30
IN_PAD = 32                              # 30 taps padded to sublane-aligned 32
H1_FLAT = H1 * W1 * C1                   # 640
OUT_PAD = 128                            # lane-dense output, sliced to 6 outside


def _round_up(x, m):
    return (x + m - 1) // m * m


def _choose_tile(batch):
    """Largest batch tile (<=1024) that still leaves >=2 grid steps when the
    batch allows it, so v7x can shard the parallel axis across both TCs."""
    half = _round_up(max((batch + 1) // 2, 1), 8)
    return max(8, min(1024, half))


def lotto_cnn_kernel(x_ref, w1_ref, b1_ref, w2_ref, b2_ref,
                     fw1_ref, fb1_ref, fw2_ref, fb2_ref, out_ref):
    """Four lane-dense MXU matmuls; bf16 operands, f32 accumulate/bias/ReLU."""
    x = x_ref[...]                                            # (TB, 32) bf16
    h1 = jnp.maximum(
        jnp.dot(x, w1_ref[...], preferred_element_type=jnp.float32)
        + b1_ref[...], 0.0).astype(jnp.bfloat16)              # conv1 + ReLU
    h2 = jnp.maximum(
        jnp.dot(h1, w2_ref[...], preferred_element_type=jnp.float32)
        + b2_ref[...], 0.0).astype(jnp.bfloat16)              # conv2 + ReLU
    z1 = jnp.maximum(
        jnp.dot(h2, fw1_ref[...], preferred_element_type=jnp.float32)
        + fb1_ref[...], 0.0).astype(jnp.bfloat16)             # fc1 + ReLU
    out_ref[...] = (
        jnp.dot(z1, fw2_ref[...], preferred_element_type=jnp.float32)
        + fb2_ref[...])                                       # fc2 (padded)


@jax.jit
def lotto_cnn_forward(x, kernel_params):
    (w1, b1, w2, b2, fw1, fb1, fw2, fb2) = kernel_params
    B = x.shape[0]

    TB = _choose_tile(B)
    B_pad = _round_up(B, TB)

    # Lane-dense bf16 input: flatten 5x6 -> 30 lanes, zero-pad to 32 lanes and
    # to a multiple of the batch tile.  Padded rows are benign (sliced away).
    x2 = jnp.zeros((B_pad, IN_PAD), jnp.bfloat16)
    x2 = x2.at[:B, :IN_FLAT].set(x.reshape(B, IN_FLAT).astype(jnp.bfloat16))

    def const_spec(shape):
        # Weights/biases: constant block index -> resident in VMEM across grid
        # steps; single-buffered since the block never changes.
        return pl.BlockSpec(shape, lambda i: (0, 0),
                            pipeline_mode=pl.Buffered(1))

    out = pl.pallas_call(
        lotto_cnn_kernel,
        out_shape=jax.ShapeDtypeStruct((B_pad, OUT_PAD), jnp.float32),
        grid_spec=pltpu.PrefetchScalarGridSpec(
            num_scalar_prefetch=0,
            grid=(B_pad // TB,),
            in_specs=[
                pl.BlockSpec((TB, IN_PAD), lambda i: (i, 0)),
                const_spec(w1.shape), const_spec(b1.shape),
                const_spec(w2.shape), const_spec(b2.shape),
                const_spec(fw1.shape), const_spec(fb1.shape),
                const_spec(fw2.shape), const_spec(fb2.shape),
            ],
            out_specs=pl.BlockSpec((TB, OUT_PAD), lambda i: (i, 0)),
        ),
        compiler_params=pltpu.CompilerParams(
            dimension_semantics=("parallel",),
            vmem_limit_bytes=48 * 1024 * 1024,
        ),
    )(x2, w1, b1, w2, b2, fw1, fb1, fw2, fb2)
    return out[:B, :OUT]


def init_torch_params(key):
    """Deterministic parameters in the original PyTorch layouts."""
    ks = jax.random.split(key, 8)

    def u(k, shape, fan_in):
        bound = 1.0 / jnp.sqrt(jnp.float32(fan_in))
        return jax.random.uniform(k, shape, jnp.float32, -bound, bound)

    return dict(
        conv1_w=u(ks[0], (C1, 1, 2, 2), 1 * 2 * 2),
        conv1_b=u(ks[1], (C1,), 1 * 2 * 2),
        conv2_w=u(ks[2], (C2, C1, 2, 2), C1 * 2 * 2),
        conv2_b=u(ks[3], (C2,), C1 * 2 * 2),
        fc1_w=u(ks[4], (HIDDEN, FLAT), FLAT),
        fc1_b=u(ks[5], (HIDDEN,), FLAT),
        fc2_w=u(ks[6], (OUT, HIDDEN), HIDDEN),
        fc2_b=u(ks[7], (OUT,), HIDDEN),
    )


def to_kernel_layout(tp):
    """Fold conv1/conv2 into dense matmul weights (bf16); pad fc2 to 128 lanes."""
    cw1 = np.asarray(tp['conv1_w'])[:, 0]        # (32, 2, 2)
    cb1 = np.asarray(tp['conv1_b'])
    cw2 = np.asarray(tp['conv2_w'])              # (64, 32, 2, 2)
    cb2 = np.asarray(tp['conv2_b'])

    # conv1 as (32, 640): input index row*6+col (padded to 32 lanes), output
    # index (i*W1 + j)*C1 + c  (channels-last flatten of conv1 activations).
    w1d = np.zeros((IN_PAD, H1_FLAT), np.float32)
    for i in range(H1):
        for j in range(W1):
            c0 = (i * W1 + j) * C1
            for di in range(2):
                for dj in range(2):
                    r = (i + di) * NUM_COLS + (j + dj)
                    w1d[r, c0:c0 + C1] = cw1[:, di, dj]
    b1d = np.tile(cb1, H1 * W1).reshape(1, H1_FLAT)

    # conv2 as (640, 768): output index co*H2*W2 + p*W2 + q == torch.flatten
    # order of the NCHW conv2 activations, so fc1 needs no permutation.
    # TODO(synk): v5e-only im2col variant (K=128, N=64) not implemented; the
    # dense zero-padded layout is the right choice on v6e/v7x.
    w2d = np.zeros((H1_FLAT, FLAT), np.float32)
    for p in range(H2):
        for q in range(W2):
            for di in range(2):
                for dj in range(2):
                    r0 = ((p + di) * W1 + (q + dj)) * C1
                    cols = np.arange(C2) * (H2 * W2) + (p * W2 + q)
                    w2d[r0:r0 + C1, cols] = cw2[:, :, di, dj].T   # (ci, co)
    b2d = np.repeat(cb2, H2 * W2).reshape(1, FLAT)

    fw1 = np.asarray(tp['fc1_w']).T              # (768, 128)
    fb1 = np.asarray(tp['fc1_b']).reshape(1, HIDDEN)

    # fc2 padded to 128 output lanes for an unmasked lane-dense store.
    fw2p = np.zeros((HIDDEN, OUT_PAD), np.float32)
    fw2p[:, :OUT] = np.asarray(tp['fc2_w']).T
    fb2p = np.zeros((1, OUT_PAD), np.float32)
    fb2p[0, :OUT] = np.asarray(tp['fc2_b'])

    # Matmul operands in bf16 (MXU already rounds DEFAULT-precision operands
    # to bf16, so this is accuracy-neutral); biases stay f32.
    return (jnp.asarray(w1d, jnp.bfloat16), jnp.asarray(b1d, jnp.float32),
            jnp.asarray(w2d, jnp.bfloat16), jnp.asarray(b2d, jnp.float32),
            jnp.asarray(fw1, jnp.bfloat16), jnp.asarray(fb1, jnp.float32),
            jnp.asarray(fw2p, jnp.bfloat16), jnp.asarray(fb2p, jnp.float32))


def reference_forward(x, tp):
    """Plain-JAX replica of LOTTO_CNN.forward (NCHW), used only to verify."""
    hp = lax.Precision.HIGHEST
    h = lax.conv_general_dilated(x[:, None], tp['conv1_w'], (1, 1), 'VALID',
                                 dimension_numbers=('NCHW', 'OIHW', 'NCHW'),
                                 precision=hp)
    h = jax.nn.relu(h + tp['conv1_b'][None, :, None, None])
    h = lax.conv_general_dilated(h, tp['conv2_w'], (1, 1), 'VALID',
                                 dimension_numbers=('NCHW', 'OIHW', 'NCHW'),
                                 precision=hp)
    h = jax.nn.relu(h + tp['conv2_b'][None, :, None, None])
    flat = h.reshape(h.shape[0], -1)
    z = jax.nn.relu(jnp.dot(flat, tp['fc1_w'].T, precision=hp) + tp['fc1_b'])
    return jnp.dot(z, tp['fc2_w'].T, precision=hp) + tp['fc2_b']


if __name__ == "__main__":
    key = jax.random.PRNGKey(0)
    k_param, k_x = jax.random.split(key)

    torch_params = init_torch_params(k_param)
    kernel_params = to_kernel_layout(torch_params)

    # Input: batch of 2 "lotto sequences", each 5 draws x 6 numbers in [1, 45]
    # (integers, exactly representable in bf16).
    x = jnp.floor(jax.random.uniform(k_x, (2, NUM_ROWS, NUM_COLS),
                                     jnp.float32, 1.0, 46.0))

    out = lotto_cnn_forward(x, kernel_params)
    out = jax.block_until_ready(out)

    ref = reference_forward(x, torch_params)
    assert out.shape == (2, OUT) and out.dtype == jnp.float32
    # bf16 MXU passes chained over 4 layers vs. an f32-HIGHEST reference;
    # tolerance reflects rounding, not structure (a layout bug would be O(1)).
    assert jnp.allclose(out, ref, rtol=2e-2, atol=1e-1), (out, ref)

    print("KERNEL_OK")
</pallas_src>

<mosaic_0001>
module attributes {stable_mosaic.version = 11 : i64} {
  func.func @lotto_cnn_kernel(%arg0: i32, %arg1: memref<8x32xbf16, #tpu.memory_space<vmem>>, %arg2: memref<32x640xbf16, #tpu.memory_space<vmem>>, %arg3: memref<1x640xf32, #tpu.memory_space<vmem>>, %arg4: memref<640x768xbf16, #tpu.memory_space<vmem>>, %arg5: memref<1x768xf32, #tpu.memory_space<vmem>>, %arg6: memref<768x128xbf16, #tpu.memory_space<vmem>>, %arg7: memref<1x128xf32, #tpu.memory_space<vmem>>, %arg8: memref<128x128xbf16, #tpu.memory_space<vmem>>, %arg9: memref<1x128xf32, #tpu.memory_space<vmem>>, %arg10: memref<8x128xf32, #tpu.memory_space<vmem>>) attributes {dimension_semantics = [#tpu.dimension_semantics<parallel>], iteration_bounds = array<i64: 1>, scalar_prefetch = 0 : i64, scratch_operands = 0 : i64, tpu.core_type = #tpu.core_type<tc>, window_params = [{transform_indices = @transform_0, window_bounds = array<i64: 8, 32>}, {pipeline_mode = #tpu.pipeline_mode<synchronous>, transform_indices = @transform_1, window_bounds = array<i64: 32, 640>}, {pipeline_mode = #tpu.pipeline_mode<synchronous>, transform_indices = @transform_2, window_bounds = array<i64: 1, 640>}, {pipeline_mode = #tpu.pipeline_mode<synchronous>, transform_indices = @transform_3, window_bounds = array<i64: 640, 768>}, {pipeline_mode = #tpu.pipeline_mode<synchronous>, transform_indices = @transform_4, window_bounds = array<i64: 1, 768>}, {pipeline_mode = #tpu.pipeline_mode<synchronous>, transform_indices = @transform_5, window_bounds = array<i64: 768, 128>}, {pipeline_mode = #tpu.pipeline_mode<synchronous>, transform_indices = @transform_6, window_bounds = array<i64: 1, 128>}, {pipeline_mode = #tpu.pipeline_mode<synchronous>, transform_indices = @transform_7, window_bounds = array<i64: 128, 128>}, {pipeline_mode = #tpu.pipeline_mode<synchronous>, transform_indices = @transform_8, window_bounds = array<i64: 1, 128>}, {transform_indices = @transform_9, window_bounds = array<i64: 8, 128>}]} {
    %c0 = arith.constant 0 : index
    %c0_0 = arith.constant 0 : index
    %0 = vector.load %arg1[%c0, %c0_0] : memref<8x32xbf16, #tpu.memory_space<vmem>>, vector<8x32xbf16>
    %c0_1 = arith.constant 0 : index
    %c0_2 = arith.constant 0 : index
    %1 = vector.load %arg2[%c0_1, %c0_2] : memref<32x640xbf16, #tpu.memory_space<vmem>>, vector<32x640xbf16>
    %cst = arith.constant dense<0.000000e+00> : vector<8x640xf32>
    %2 = tpu.matmul %0, %1, %cst {dimension_numbers = #tpu.dot_dimension_numbers<[1], [0], [0], [1], [0, 0, 1, 1], [], []>} : vector<8x32xbf16>, vector<32x640xbf16>, vector<8x640xf32> -> vector<8x640xf32>
    %c0_3 = arith.constant 0 : index
    %c0_4 = arith.constant 0 : index
    %3 = vector.load %arg3[%c0_3, %c0_4] : memref<1x640xf32, #tpu.memory_space<vmem>>, vector<1x640xf32>
    %4 = vector.broadcast %3 : vector<1x640xf32> to vector<8x640xf32>
    %5 = arith.addf %2, %4 : vector<8x640xf32>
    %cst_5 = arith.constant 0.000000e+00 : f32
    %6 = vector.broadcast %cst_5 : f32 to vector<8x640xf32>
    %7 = arith.maximumf %5, %6 : vector<8x640xf32>
    %8 = arith.truncf %7 : vector<8x640xf32> to vector<8x640xbf16>
    %c0_6 = arith.constant 0 : index
    %c0_7 = arith.constant 0 : index
    %9 = vector.load %arg4[%c0_6, %c0_7] : memref<640x768xbf16, #tpu.memory_space<vmem>>, vector<640x768xbf16>
    %cst_8 = arith.constant dense<0.000000e+00> : vector<8x768xf32>
    %10 = tpu.matmul %8, %9, %cst_8 {dimension_numbers = #tpu.dot_dimension_numbers<[1], [0], [0], [1], [0, 0, 1, 1], [], []>} : vector<8x640xbf16>, vector<640x768xbf16>, vector<8x768xf32> -> vector<8x768xf32>
    %c0_9 = arith.constant 0 : index
    %c0_10 = arith.constant 0 : index
    %11 = vector.load %arg5[%c0_9, %c0_10] : memref<1x768xf32, #tpu.memory_space<vmem>>, vector<1x768xf32>
    %12 = vector.broadcast %11 : vector<1x768xf32> to vector<8x768xf32>
    %13 = arith.addf %10, %12 : vector<8x768xf32>
    %cst_11 = arith.constant 0.000000e+00 : f32
    %14 = vector.broadcast %cst_11 : f32 to vector<8x768xf32>
    %15 = arith.maximumf %13, %14 : vector<8x768xf32>
    %16 = arith.truncf %15 : vector<8x768xf32> to vector<8x768xbf16>
    %c0_12 = arith.constant 0 : index
    %c0_13 = arith.constant 0 : index
    %17 = vector.load %arg6[%c0_12, %c0_13] : memref<768x128xbf16, #tpu.memory_space<vmem>>, vector<768x128xbf16>
    %cst_14 = arith.constant dense<0.000000e+00> : vector<8x128xf32>
    %18 = tpu.matmul %16, %17, %cst_14 {dimension_numbers = #tpu.dot_dimension_numbers<[1], [0], [0], [1], [0, 0, 1, 1], [], []>} : vector<8x768xbf16>, vector<768x128xbf16>, vector<8x128xf32> -> vector<8x128xf32>
    %c0_15 = arith.constant 0 : index
    %c0_16 = arith.constant 0 : index
    %19 = vector.load %arg7[%c0_15, %c0_16] : memref<1x128xf32, #tpu.memory_space<vmem>>, vector<1x128xf32>
    %20 = vector.broadcast %19 : vector<1x128xf32> to vector<8x128xf32>
    %21 = arith.addf %18, %20 : vector<8x128xf32>
    %cst_17 = arith.constant 0.000000e+00 : f32
    %22 = vector.broadcast %cst_17 : f32 to vector<8x128xf32>
    %23 = arith.maximumf %21, %22 : vector<8x128xf32>
    %24 = arith.truncf %23 : vector<8x128xf32> to vector<8x128xbf16>
    %c0_18 = arith.constant 0 : index
    %c0_19 = arith.constant 0 : index
    %25 = vector.load %arg8[%c0_18, %c0_19] : memref<128x128xbf16, #tpu.memory_space<vmem>>, vector<128x128xbf16>
    %cst_20 = arith.constant dense<0.000000e+00> : vector<8x128xf32>
    %26 = tpu.matmul %24, %25, %cst_20 {dimension_numbers = #tpu.dot_dimension_numbers<[1], [0], [0], [1], [0, 0, 1, 1], [], []>} : vector<8x128xbf16>, vector<128x128xbf16>, vector<8x128xf32> -> vector<8x128xf32>
    %c0_21 = arith.constant 0 : index
    %c0_22 = arith.constant 0 : index
    %27 = vector.load %arg9[%c0_21, %c0_22] : memref<1x128xf32, #tpu.memory_space<vmem>>, vector<1x128xf32>
    %28 = vector.broadcast %27 : vector<1x128xf32> to vector<8x128xf32>
    %29 = arith.addf %26, %28 : vector<8x128xf32>
    %c0_23 = arith.constant 0 : index
    %c0_24 = arith.constant 0 : index
    %30 = vector.load %arg10[%c0_23, %c0_24] : memref<8x128xf32, #tpu.memory_space<vmem>>, vector<8x128xf32>
    tpu.vector_store %arg10[%c0_23, %c0_24], %29 {strides = array<i32>} : memref<8x128xf32, #tpu.memory_space<vmem>>, vector<8x128xf32>,
    return
  }
  func.func @transform_0(%arg0: i32) -> (i32, i32) {
    %c0_i32 = arith.constant 0 : i32
    %c0_i32_0 = arith.constant 0 : i32
    return %arg0, %c0_i32 : i32, i32
  }
  func.func @transform_1(%arg0: i32) -> (i32, i32) {
    %c0_i32 = arith.constant 0 : i32
    %c0_i32_0 = arith.constant 0 : i32
    %c0_i32_1 = arith.constant 0 : i32
    return %c0_i32, %c0_i32_0 : i32, i32
  }
  func.func @transform_2(%arg0: i32) -> (i32, i32) {
    %c0_i32 = arith.constant 0 : i32
    %c0_i32_0 = arith.constant 0 : i32
    %c0_i32_1 = arith.constant 0 : i32
    return %c0_i32, %c0_i32_0 : i32, i32
  }
  func.func @transform_3(%arg0: i32) -> (i32, i32) {
    %c0_i32 = arith.constant 0 : i32
    %c0_i32_0 = arith.constant 0 : i32
    %c0_i32_1 = arith.constant 0 : i32
    return %c0_i32, %c0_i32_0 : i32, i32
  }
  func.func @transform_4(%arg0: i32) -> (i32, i32) {
    %c0_i32 = arith.constant 0 : i32
    %c0_i32_0 = arith.constant 0 : i32
    %c0_i32_1 = arith.constant 0 : i32
    return %c0_i32, %c0_i32_0 : i32, i32
  }
  func.func @transform_5(%arg0: i32) -> (i32, i32) {
    %c0_i32 = arith.constant 0 : i32
    %c0_i32_0 = arith.constant 0 : i32
    %c0_i32_1 = arith.constant 0 : i32
    return %c0_i32, %c0_i32_0 : i32, i32
  }
  func.func @transform_6(%arg0: i32) -> (i32, i32) {
    %c0_i32 = arith.constant 0 : i32
    %c0_i32_0 = arith.constant 0 : i32
    %c0_i32_1 = arith.constant 0 : i32
    return %c0_i32, %c0_i32_0 : i32, i32
  }
  func.func @transform_7(%arg0: i32) -> (i32, i32) {
    %c0_i32 = arith.constant 0 : i32
    %c0_i32_0 = arith.constant 0 : i32
    %c0_i32_1 = arith.constant 0 : i32
    return %c0_i32, %c0_i32_0 : i32, i32
  }
  func.func @transform_8(%arg0: i32) -> (i32, i32) {
    %c0_i32 = arith.constant 0 : i32
    %c0_i32_0 = arith.constant 0 : i32
    %c0_i32_1 = arith.constant 0 : i32
    return %c0_i32, %c0_i32_0 : i32, i32
  }
  func.func @transform_9(%arg0: i32) -> (i32, i32) {
    %c0_i32 = arith.constant 0 : i32
    %c0_i32_0 = arith.constant 0 : i32
    return %arg0, %c0_i32 : i32, i32
  }
}

</mosaic_0001>

<bundles_post_ra>
// kernel: lotto_cnn_forward.1
= control target key start
LH: loop header
LB: loop body
LE: loop exit
PB: predicated region body
PF: predicated region fallthrough
CT: control target
= control target key end

     0   :  { %14 = vsyncpa [#allocation3], 0  ;;  %s4073_s0 = inlined_call_operand.vmem [shape: bf16[8,32], index: 0, kind: input, shape index: {}]   ;;  %s4074_s1 = inlined_call_operand.hbm [shape: bf16[32,640], index: 1, kind: input, shape index: {}]   ;;  %s4075_s2 = inlined_call_operand.vmem [shape: f32[1,640], index: 2, kind: input, shape index: {}]   ;;  %s4076_s3 = inlined_call_operand.hbm [shape: bf16[640,768], index: 3, kind: input, shape index: {}]   ;;  %s4077_s4 = inlined_call_operand.hbm [shape: f32[1,768], index: 4, kind: input, shape index: {}]   ;;  %s4078_s5 = inlined_call_operand.hbm [shape: bf16[768,128], index: 5, kind: input, shape index: {}]   ;;  %s4079_s6 = inlined_call_operand.hbm [shape: f32[1,128], index: 6, kind: input, shape index: {}]   ;;  %s4080_s7 = inlined_call_operand.vmem [shape: bf16[128,128], index: 7, kind: input, shape index: {}]   ;;  %s4081_s8 = inlined_call_operand.vmem [shape: f32[1,128], index: 8, kind: input, shape index: {}]   ;;  %s4082_s9 = inlined_call_operand.vmem [shape: f32[8,128], index: 9, kind: output, shape index: {}]  }
   0x1   :  { %15 = vsyncpa [#allocation5], 0 }
   0x2   :  { %16 = vsyncpa [#allocation8], 0  ;;  %s3817_s30 = smov [#allocation4]   ;;  %s3701_s13 = scalar_lea.hbm %s4076_s3, 30720 }
   0x3   :  { %s38_s10 = sshll.u32 %s3817_s30, 4  ;;  %p3702_p0 = scmp.ne.s32.totalorder %s4076_s3, %s3701_s13  ;;  %s39_s10 = int_to_ptr.vmem [resolvable:$true] %s38_s10 }
   0x4   :  { %p3705_p1 = scmp.lt.u32.totalorder %s3701_s13, %s4076_s3 }
   0x6   :  { %p3707_p2 = pnand %p3705_p1, %p3702_p0 }
   0x8   :  { %3710 = shalt.err (!%p3707_p2)
}
   0x9   :  { %s3711_s18 = scalar_lea.vmem %s39_s10, 30720  ;;  %p3716_p4 = scmp.lt.s32.totalorder %s39_s10, %s39_s10 }
   0xa   :  { %p3712_p3 = scmp.ne.s32.totalorder %s39_s10, %s3711_s18  ;;  %p3717_p5 = scmp.lt.s32.totalorder %s3711_s18, %s3711_s18 }
   0xc   :  { %p3718_p6 = por %p3717_p5, %p3716_p4 }
   0xe   :  { %p3719_p7 = pnand %p3718_p6, %p3712_p3 }
  0x10   :  { %3722 = shalt.err (!%p3719_p7)
}
  0x11   :  { %s3818_s19 = smov 384   ;;  %s3819_s20 = smov 24  }
  0x12   :  { %44 = dma.hbm_to_vmem [thread:$0]  %s4076_s3, 30720, %s39_s10, [#allocation5], %s3818_s19, %s3818_s19, %s3819_s20  }
  0x13   :  { %s3820_s23 = smov [#allocation7]   ;;  %s3723_s27 = scalar_lea.hbm %s4078_s5, 6144 }
  0x14   :  { %s60_s24 = sshll.u32 %s3820_s23, 4  ;;  %p3724_p8 = scmp.ne.s32.totalorder %s4078_s5, %s3723_s27  ;;  %s61_s24 = int_to_ptr.vmem [resolvable:$true] %s60_s24 }
  0x15   :  { %p3727_p9 = scmp.lt.u32.totalorder %s3723_s27, %s4078_s5 }
  0x17   :  { %p3729_p10 = pnand %p3727_p9, %p3724_p8 }
  0x19   :  { %3732 = shalt.err (!%p3729_p10)
}
  0x1a   :  { %s3733_s12 = scalar_lea.vmem %s61_s24, 6144  ;;  %p3738_p12 = scmp.lt.s32.totalorder %s61_s24, %s61_s24 }
  0x1b   :  { %p3734_p11 = scmp.ne.s32.totalorder %s61_s24, %s3733_s12  ;;  %p3739_p13 = scmp.lt.s32.totalorder %s3733_s12, %s3733_s12 }
  0x1d   :  { %p3740_p0 = por %p3739_p13, %p3738_p12 }
  0x1f   :  { %p3741_p1 = pnand %p3740_p0, %p3734_p11 }
  0x21   :  { %3744 = shalt.err (!%p3741_p1)
}
  0x22   :  { %s3821_s3 = smov 64   ;;  %s3822_s10 = smov 4  }
  0x23   :  { %66 = dma.hbm_to_vmem [thread:$0]  %s4078_s5, 6144, %s61_s24, [#allocation8], %s3821_s3, %s3821_s3, %s3822_s10  }
  0x24   :  { %s3823_s15 = smov [#allocation2]   ;;  %s3745_s19 = scalar_lea.hbm %s4074_s1, 1280 }
  0x25   :  { %s24_s16 = sshll.u32 %s3823_s15, 4  ;;  %p3746_p2 = scmp.ne.s32.totalorder %s4074_s1, %s3745_s19  ;;  %s25_s16 = int_to_ptr.vmem [resolvable:$true] %s24_s16 }
  0x26   :  { %p3749_p3 = scmp.lt.u32.totalorder %s3745_s19, %s4074_s1 }
  0x28   :  { %p3751_p4 = pnand %p3749_p3, %p3746_p2 }
  0x2a   :  { %3754 = shalt.err (!%p3751_p4)
}
  0x2b   :  { %s3755_s25 = scalar_lea.vmem %s25_s16, 1280  ;;  %p3760_p6 = scmp.lt.s32.totalorder %s25_s16, %s25_s16 }
  0x2c   :  { %p3756_p5 = scmp.ne.s32.totalorder %s25_s16, %s3755_s25  ;;  %p3761_p7 = scmp.lt.s32.totalorder %s3755_s25, %s3755_s25 }
  0x2e   :  { %p3762_p8 = por %p3761_p7, %p3760_p6 }
  0x30   :  { %p3763_p9 = pnand %p3762_p8, %p3756_p5 }
  0x32   :  { %3766 = shalt.err (!%p3763_p9)
}
  0x33   :  { %s3824_s5 = smov 320   ;;  %s3825_s24 = smov 20  }
  0x34   :  { %30 = dma.hbm_to_vmem [thread:$0]  %s4074_s1, 1280, %s25_s16, [#allocation3], %s3824_s5, %s3824_s5, %s3825_s24  }
  0x35   :  { %s3826_s28 = smov [#allocation6]   ;;  %s3827_s30 = smov [#allocation9]  }
  0x36   :  { %s51_s29 = sshll.u32 %s3826_s28, 4  ;;  %s73_s11 = sshll.u32 %s3827_s30, 4  ;;  %s52_s29 = int_to_ptr.vmem [resolvable:$true] %s51_s29  ;;  %s74_s11 = int_to_ptr.vmem [resolvable:$true] %s73_s11 }
  0x37   :  { %s3767_s10 = scalar_lea.hbm %s4077_s4, 96 }
  0x38   :  { %p3768_p10 = scmp.ne.s32.totalorder %s4077_s4, %s3767_s10  ;;  %p3771_p11 = scmp.lt.u32.totalorder %s3767_s10, %s4077_s4 }
  0x3a   :  { %p3773_p12 = pnand %p3771_p11, %p3768_p10 }
  0x3c   :  { %3776 = shalt.err (!%p3773_p12)
}
  0x3d   :  { %s3777_s1 = scalar_lea.vmem %s52_s29, 96  ;;  %p3782_p0 = scmp.lt.s32.totalorder %s52_s29, %s52_s29 }
  0x3e   :  { %p3778_p13 = scmp.ne.s32.totalorder %s52_s29, %s3777_s1  ;;  %p3783_p1 = scmp.lt.s32.totalorder %s3777_s1, %s3777_s1 }
  0x40   :  { %p3784_p2 = por %p3783_p1, %p3782_p0 }
  0x42   :  { %p3785_p3 = pnand %p3784_p2, %p3778_p13 }
  0x44   :  { %3788 = shalt.err (!%p3785_p3)
}
  0x45   :  { %54 = dma.hbm_to_vmem [thread:$0]  %s4077_s4, 96, %s52_s29, [#allocation5]  }
  0x46   :  { %s3789_s21 = scalar_lea.hbm %s4079_s6, 16 }
  0x47   :  { %p3790_p4 = scmp.ne.s32.totalorder %s4079_s6, %s3789_s21  ;;  %p3793_p5 = scmp.lt.u32.totalorder %s3789_s21, %s4079_s6 }
  0x49   :  { %p3795_p6 = pnand %p3793_p5, %p3790_p4 }
  0x4b   :  { %3798 = shalt.err (!%p3795_p6)
}
  0x4c   :  { %s3799_s24 = scalar_lea.vmem %s74_s11, 16  ;;  %s3803_s26 = scalar_lea.vmem %s74_s11, 32 }
  0x4d   :  { %p3800_p7 = scmp.ne.s32.totalorder %s74_s11, %s3799_s24  ;;  %p3804_p8 = scmp.lt.s32.totalorder %s74_s11, %s74_s11 }
  0x4e   :  { %p3805_p9 = scmp.lt.s32.totalorder %s3803_s26, %s3799_s24 }
  0x50   :  { %p3806_p10 = por %p3805_p9, %p3804_p8 }
  0x52   :  { %p3807_p11 = pnand %p3806_p10, %p3800_p7 }
  0x54   :  { %3810 = shalt.err (!%p3807_p11)
}
  0x55   :  { %76 = dma.hbm_to_vmem [thread:$0]  %s4079_s6, 16, %s74_s11, [#allocation8]  }
  0x56   :  { %3811 = dma.done.wait [#allocation3], 1280  }
  0x57   :  { %3812 = vsyncadd [#allocation3], 4294966016 }
  0x58   :  { %3813 = dma.done.wait [#allocation5], 30816  }
  0x59   :  { %3814 = vsyncadd [#allocation5], 4294936480 }
  0x5a   :  { %3815 = dma.done.wait [#allocation8], 6160  }
  0x5b   :  { %3816 = vsyncadd [#allocation8], 4294961136  ;;  %v3828_v0 = vmov 0   ;;  %v3271_v1 = vld [vmem:[#allocation2 + $0x4] ss:$20 sps:$4 sm:$0xff]   ;;  %vm189_vm0 = vcmask 261120  }
  0x5c   :  { %225 = vmatprep.mubr.bf16.mxu0 %v3828_v0  ;;  %v3273_v2 = vld [vmem:[#allocation2] ss:$20 sps:$4 sm:$0xff]   ;;  %193 = vmatprep.subr.bf16.mxu0 %v3271_v1  ;;  %v3276_v4 = vld [vmem:[#allocation2 + $0x28] ss:$20 sps:$4 sm:$0xff]   ;;  %v3280_v10 = vld [vmem:[#allocation2 + $0x30] ss:$20 sps:$4 sm:$0xff]  }
  0x5d   :  { %v3274_v3 = vld [vmem:[#allocation2 + $0x2c] ss:$20 sps:$4 sm:$0xff]   ;;  %194 = vmatpush1.bf16.msra.mxu0 %v3273_v2  ;;  %v3277_v7 = vld [vmem:[#allocation2 + $0x8] ss:$20 sps:$4 sm:$0xff]   ;;  %v3283_v15 = vld [vmem:[#allocation2 + $0x10] ss:$20 sps:$4 sm:$0xff]  }
  0x5e   :  { %195 = vmatprep.subr.bf16.mxu0 %v3274_v3  ;;  %v3279_v5 = vld [vmem:[#allocation2 + $0xc] ss:$20 sps:$4 sm:$0xff]   ;;  %v3282_v8 = vld [vmem:[#allocation2 + $0x34] ss:$20 sps:$4 sm:$0xff]   ;;  %v3291_v12 = vld [vmem:[#allocation4 + $0x34] ss:$24 sps:$4 sm:$0xff]  }
  0x5f   :  { %v97_v6 = vld [vmem:[%s4073_s0] sm:$0xf]  ;;  %v3285_v9 = vld [vmem:[#allocation4 + $0x4] ss:$24 sps:$4 sm:$0xff]   ;;  %v3290_v11 = vld [vmem:[#allocation4] ss:$24 sps:$4 sm:$0xff]  }
  0x60   :  { %1797 = vmatprep.subr.bf16.mxu1 %v3285_v9  ;;  %v3296_v13 = vld [vmem:[#allocation4 + $0x30] ss:$24 sps:$4 sm:$0xff]   ;;  %v3297_v14 = vld [vmem:[#allocation4 + $0x64] ss:$24 sps:$4 sm:$0xff]   ;;  %v3829_v16 = vmov 0.0   ;;  %vm3830_vm1 = vmmov 0  }
  0x61   :  { %196 = vmatpush1.bf16.msra.mxu0 %v3276_v4  ;;  %1798 = vmatpush1.bf16.msra.mxu1 %v3290_v11  ;;  %v3302_v17 = vld [vmem:[#allocation4 + $0x60] ss:$24 sps:$4 sm:$0xff]   ;;  %v3303_v18 = vld [vmem:[#allocation4 + $0x94] ss:$24 sps:$4 sm:$0xff]   ;;  %v3284_v19 = vld [vmem:[#allocation2 + $0x38] ss:$20 sps:$4 sm:$0xff]  }
  0x62   :  { %234 = vmatprep.subr.bf16.mxu0 %v3279_v5  ;;  %1799 = vmatprep.subr.bf16.mxu1 %v3291_v12  ;;  %v3289_v20 = vld [vmem:[#allocation4 + $0xc] ss:$24 sps:$4 sm:$0xff]   ;;  %v3308_v21 = vld [vmem:[#allocation4 + $0x90] ss:$24 sps:$4 sm:$0xff]   ;;  %v3295_v24 = vld [vmem:[#allocation4 + $0x3c] ss:$24 sps:$4 sm:$0xff]  }
  0x63   :  { %v3309_v22 = vld [vmem:[#allocation4 + $0xc4] ss:$24 sps:$4 sm:$0xff]   ;;  %v3287_v23 = vld [vmem:[#allocation4 + $0x8] ss:$24 sps:$4 sm:$0xff]   ;;  %v3315_v26 = vld [vmem:[#allocation4 + $0xf4] ss:$24 sps:$4 sm:$0xff]  }
  0x64   :  { %2820 = vmatmul.mubr.msk.bf16.vlgmr.msra.gmra.mrb[0].mxu0 %vm189_vm0, %v97_v6  ;;  %v3314_v25 = vld [vmem:[#allocation4 + $0xc0] ss:$24 sps:$4 sm:$0xff]   ;;  %v3301_v28 = vld [vmem:[#allocation4 + $0x6c] ss:$24 sps:$4 sm:$0xff]   ;;  %v3320_v29 = vld [vmem:[#allocation4 + $0xf0] ss:$24 sps:$4 sm:$0xff]  }
  0x65   :  { %235 = vmatpush1.bf16.msra.mxu0 %v3277_v7  ;;  %266 = vmatprep.mubr.bf16.mxu0 %v3828_v0  ;;  %v3293_v27 = vld [vmem:[#allocation4 + $0x38] ss:$24 sps:$4 sm:$0xff]   ;;  %v3321_v30 = vld [vmem:[#allocation4 + $0x124] ss:$24 sps:$4 sm:$0xff]   ;;  %v3299_v31 = vld [vmem:[#allocation4 + $0x68] ss:$24 sps:$4 sm:$0xff]  }
  0x66   :  { %236 = vmatprep.subr.bf16.mxu0 %v3282_v8  ;;  %1800 = vmatpush1.bf16.msra.mxu1 %v3296_v13  ;;  %v3307_v32 = vld [vmem:[#allocation4 + $0x9c] ss:$24 sps:$4 sm:$0xff]   ;;  %v3326_v33 = vld [vmem:[#allocation4 + $0x120] ss:$24 sps:$4 sm:$0xff]   ;;  %v3313_v36 = vld [vmem:[#allocation4 + $0xcc] ss:$24 sps:$4 sm:$0xff]  }
  0x67   :  { %1801 = vmatprep.subr.bf16.mxu1 %v3297_v14  ;;  %v3327_v34 = vld [vmem:[#allocation4 + $0x154] ss:$24 sps:$4 sm:$0xff]   ;;  %v3305_v35 = vld [vmem:[#allocation4 + $0x98] ss:$24 sps:$4 sm:$0xff]   ;;  %v3333_v38 = vld [vmem:[#allocation4 + $0x184] ss:$24 sps:$4 sm:$0xff]  }
  0x68   :  { %v3332_v37 = vld [vmem:[#allocation4 + $0x150] ss:$24 sps:$4 sm:$0xff]   ;;  %v3319_v40 = vld [vmem:[#allocation4 + $0xfc] ss:$24 sps:$4 sm:$0xff]   ;;  %v3338_v41 = vld [vmem:[#allocation4 + $0x180] ss:$24 sps:$4 sm:$0xff]  }
  0x69   :  { %237 = vmatpush1.bf16.msra.mxu0 %v3280_v10  ;;  %v3311_v39 = vld [vmem:[#allocation4 + $0xc8] ss:$24 sps:$4 sm:$0xff]   ;;  %v3339_v42 = vld [vmem:[#allocation4 + $0x1b4] ss:$24 sps:$4 sm:$0xff]   ;;  %v3317_v43 = vld [vmem:[#allocation4 + $0xf8] ss:$24 sps:$4 sm:$0xff]  }
  0x6a   :  { %3199 = vmatprep.subr.bf16.mxu0 %v3829_v16  ;;  %1802 = vmatpush1.bf16.msra.mxu1 %v3302_v17  ;;  %v3325_v44 = vld [vmem:[#allocation4 + $0x12c] ss:$24 sps:$4 sm:$0xff]   ;;  %v3344_v45 = vld [vmem:[#allocation4 + $0x1b0] ss:$24 sps:$4 sm:$0xff]   ;;  %v3331_v48 = vld [vmem:[#allocation4 + $0x15c] ss:$24 sps:$4 sm:$0xff]   ;;  %v112_v17 = vlaneseq }
  0x6b   :  { %1803 = vmatprep.subr.bf16.mxu1 %v3303_v18  ;;  %v3323_v46 = vld [vmem:[#allocation4 + $0x128] ss:$24 sps:$4 sm:$0xff]   ;;  %v3345_v47 = vld [vmem:[#allocation4 + $0x1e4] ss:$24 sps:$4 sm:$0xff]   ;;  %v3351_v50 = vld [vmem:[#allocation4 + $0x214] ss:$24 sps:$4 sm:$0xff]  }
  0x6c   :  { %2821 = vmatmul.mubr.msk.bf16.vlgmr.msra.gmra.mrb[4].mxu0 %vm189_vm0, %v97_v6  ;;  %v3350_v49 = vld [vmem:[#allocation4 + $0x1e0] ss:$24 sps:$4 sm:$0xff]   ;;  %v3337_v52 = vld [vmem:[#allocation4 + $0x18c] ss:$24 sps:$4 sm:$0xff]   ;;  %v3356_v53 = vld [vmem:[#allocation4 + $0x210] ss:$24 sps:$4 sm:$0xff]  }
  0x6d   :  { %3200 = vmatpush3.bf16.msra.mxu0 %v3283_v15  ;;  %3203 = vmatprep.mubr.msk.bf16.mxu0 %vm3830_vm1, %v3829_v16  ;;  %v3329_v51 = vld [vmem:[#allocation4 + $0x158] ss:$24 sps:$4 sm:$0xff]   ;;  %v3357_v54 = vld [vmem:[#allocation4 + $0x244] ss:$24 sps:$4 sm:$0xff]   ;;  %v3335_v55 = vld [vmem:[#allocation4 + $0x188] ss:$24 sps:$4 sm:$0xff]  }
  0x6e   :  { %3201 = vmatprep.subr.bf16.mxu0 %v3829_v16  ;;  %1804 = vmatpush1.bf16.msra.mxu1 %v3308_v21  ;;  %v3343_v56 = vld [vmem:[#allocation4 + $0x1bc] ss:$24 sps:$4 sm:$0xff]   ;;  %v3362_v57 = vld [vmem:[#allocation4 + $0x240] ss:$24 sps:$4 sm:$0xff]   ;;  %v3349_v60 = vld [vmem:[#allocation4 + $0x1ec] ss:$24 sps:$4 sm:$0xff]  }
  0x6f   :  { %1805 = vmatprep.subr.bf16.mxu1 %v3309_v22  ;;  %v3363_v58 = vld [vmem:[#allocation4 + $0x274] ss:$24 sps:$4 sm:$0xff]   ;;  %v3341_v59 = vld [vmem:[#allocation4 + $0x1b8] ss:$24 sps:$4 sm:$0xff]   ;;  %v3347_v62 = vld [vmem:[#allocation4 + $0x1e8] ss:$24 sps:$4 sm:$0xff]  }
  0x70   :  { %v3368_v61 = vld [vmem:[#allocation4 + $0x270] ss:$24 sps:$4 sm:$0xff]   ;;  %v3355_v63 = vld [vmem:[#allocation4 + $0x21c] ss:$24 sps:$4 sm:$0xff]   ;;  %v3361_v2 = vld [vmem:[#allocation4 + $0x24c] ss:$24 sps:$4 sm:$0xff]  }
  0x71   :  { %3202 = vmatpush3.bf16.msra.mxu0 %v3284_v19  ;;  %v3353_v1 = vld [vmem:[#allocation4 + $0x218] ss:$24 sps:$4 sm:$0xff]   ;;  %v3359_v3 = vld [vmem:[#allocation4 + $0x248] ss:$24 sps:$4 sm:$0xff]   ;;  %v3367_v4 = vld [vmem:[#allocation4 + $0x27c] ss:$24 sps:$4 sm:$0xff]  }
  0x72   :  { %1920 = vmatprep.subr.bf16.mxu0 %v3289_v20  ;;  %1806 = vmatpush1.bf16.msra.mxu1 %v3314_v25  ;;  %v3365_v5 = vld [vmem:[#allocation4 + $0x278] ss:$24 sps:$4 sm:$0xff]   ;;  %v3373_v7 = vld [vmem:[#allocation4 + $0x2ac] ss:$24 sps:$4 sm:$0xff]   ;;  %v3371_v8 = vld [vmem:[#allocation4 + $0x2a8] ss:$24 sps:$4 sm:$0xff]  }
  0x73   :  { %1807 = vmatprep.subr.bf16.mxu1 %v3315_v26  ;;  %v3374_v9 = vld [vmem:[#allocation4 + $0x2a0] ss:$24 sps:$4 sm:$0xff]   ;;  %v3375_v10 = vld [vmem:[#allocation4 + $0x2d4] ss:$24 sps:$4 sm:$0xff]   ;;  %v3380_v13 = vld [vmem:[#allocation4 + $0x2d0] ss:$24 sps:$4 sm:$0xff]  }
  0x74   :  { %3204 = vmatmul.mubr.msk.bf16.vlgmr.msra.gmra.mrb[8].mxu0 %vm189_vm0, %v97_v6  ;;  %v3369_v6 = vld [vmem:[#allocation4 + $0x2a4] ss:$24 sps:$4 sm:$0xff]   ;;  %v3377_v12 = vld [vmem:[#allocation4 + $0x2d8] ss:$24 sps:$4 sm:$0xff]   ;;  %v3953_v18 = vshrl.u32 %v112_v17, 7 }
  0x75   :  { %1921 = vmatpush1.bf16.msra.mxu0 %v3287_v23  ;;  %v3379_v11 = vld [vmem:[#allocation4 + $0x2dc] ss:$24 sps:$4 sm:$0xff]   ;;  %v3386_v15 = vld [vmem:[#allocation4 + $0x30c] ss:$24 sps:$4 sm:$0xff]   ;;  %v3429_v17 = vld [vmem:[#allocation4 + $0x480] ss:$24 sps:$4 sm:$0xff]  }
  0x76   :  { %1922 = vmatprep.subr.bf16.mxu0 %v3295_v24  ;;  %1808 = vmatpush1.bf16.msra.mxu1 %v3320_v29  ;;  %v3383_v14 = vld [vmem:[#allocation4 + $0x304] ss:$24 sps:$4 sm:$0xff]   ;;  %v114_v19 = vsub.s32 0, %v3953_v18  ;;  %v3959_v20 = vld [vmem:[%s4075_s2] sm:$0x1f]  ;;  %v118_v21 = vsub.s32 1, %v3953_v18 }
  0x77   :  { %1809 = vmatprep.subr.bf16.mxu1 %v3321_v30  ;;  %v126_v29 = vsub.s32 3, %v3953_v18 }
  0x78   :  { %v115_v22 = vrot.slane %v3959_v20, %v114_v19  ;;  %v119_v23 = vrot.slane %v3959_v20, %v118_v21 }
  0x79   :  { %1923 = vmatpush1.bf16.msra.mxu0 %v3293_v27 }
  0x7a   :  { %1924 = vmatprep.subr.bf16.mxu0 %v3301_v28  ;;  %1810 = vmatpush1.bf16.msra.mxu1 %v3326_v33 }
  0x7b   :  { %1811 = vmatprep.subr.bf16.mxu1 %v3327_v34  ;;  %v3381_v34 = vld [vmem:[#allocation4 + $0x300] ss:$24 sps:$4 sm:$0xff]  }
  0x7d   :  { %1925 = vmatpush1.bf16.msra.mxu0 %v3299_v31 }
  0x7e   :  { %1926 = vmatprep.subr.bf16.mxu0 %v3307_v32  ;;  %1812 = vmatpush1.bf16.msra.mxu1 %v3332_v37 }
  0x7f   :  { %1813 = vmatprep.subr.bf16.mxu1 %v3333_v38  ;;  %v3389_v38 = vld [vmem:[#allocation4 + $0x334] ss:$24 sps:$4 sm:$0xff]  }
  0x81   :  { %1927 = vmatpush1.bf16.msra.mxu0 %v3305_v35  ;;  %v3384_v35 = vld [vmem:[#allocation4 + $0x308] ss:$24 sps:$4 sm:$0xff]  }
  0x82   :  { %1928 = vmatprep.subr.bf16.mxu0 %v3313_v36  ;;  %1814 = vmatpush1.bf16.msra.mxu1 %v3338_v41  ;;  %v127_v36 = vrot.slane %v3959_v20, %v126_v29 }
  0x83   :  { %1815 = vmatprep.subr.bf16.mxu1 %v3339_v42  ;;  %v3387_v42 = vld [vmem:[#allocation4 + $0x330] ss:$24 sps:$4 sm:$0xff]  }
  0x85   :  { %1929 = vmatpush1.bf16.msra.mxu0 %v3311_v39  ;;  %v3392_v39 = vld [vmem:[#allocation4 + $0x33c] ss:$24 sps:$4 sm:$0xff]  }
  0x86   :  { %1930 = vmatprep.subr.bf16.mxu0 %v3319_v40  ;;  %1816 = vmatpush1.bf16.msra.mxu1 %v3344_v45 }
  0x87   :  { %1817 = vmatprep.subr.bf16.mxu1 %v3345_v47  ;;  %v3398_v47 = vld [vmem:[#allocation4 + $0x36c] ss:$24 sps:$4 sm:$0xff]  }
  0x89   :  { %1931 = vmatpush1.bf16.msra.mxu0 %v3317_v43  ;;  %v3390_v43 = vld [vmem:[#allocation4 + $0x338] ss:$24 sps:$4 sm:$0xff]  }
  0x8a   :  { %1932 = vmatprep.subr.bf16.mxu0 %v3325_v44  ;;  %1818 = vmatpush1.bf16.msra.mxu1 %v3350_v49 }
  0x8b   :  { %1819 = vmatprep.subr.bf16.mxu1 %v3351_v50  ;;  %v3393_v50 = vld [vmem:[#allocation4 + $0x360] ss:$24 sps:$4 sm:$0xff]  }
  0x8d   :  { %1933 = vmatpush1.bf16.msra.mxu0 %v3323_v46  ;;  %v3395_v46 = vld [vmem:[#allocation4 + $0x364] ss:$24 sps:$4 sm:$0xff]  }
  0x8e   :  { %1934 = vmatprep.subr.bf16.mxu0 %v3331_v48  ;;  %1820 = vmatpush1.bf16.msra.mxu1 %v3356_v53  ;;  %v3401_v53 = vld [vmem:[#allocation4 + $0x394] ss:$24 sps:$4 sm:$0xff]  }
  0x8f   :  { %1821 = vmatprep.subr.bf16.mxu1 %v3357_v54  ;;  %v3404_v54 = vld [vmem:[#allocation4 + $0x39c] ss:$24 sps:$4 sm:$0xff]  }
  0x91   :  { %1935 = vmatpush1.bf16.msra.mxu0 %v3329_v51  ;;  %v3396_v51 = vld [vmem:[#allocation4 + $0x368] ss:$24 sps:$4 sm:$0xff]  }
  0x92   :  { %1936 = vmatprep.subr.bf16.mxu0 %v3337_v52  ;;  %1822 = vmatpush1.bf16.msra.mxu1 %v3362_v57  ;;  %v3399_v57 = vld [vmem:[#allocation4 + $0x390] ss:$24 sps:$4 sm:$0xff]  }
  0x93   :  { %1823 = vmatprep.subr.bf16.mxu1 %v3363_v58  ;;  %v3402_v58 = vld [vmem:[#allocation4 + $0x398] ss:$24 sps:$4 sm:$0xff]  }
  0x95   :  { %1937 = vmatpush1.bf16.msra.mxu0 %v3335_v55 }
  0x96   :  { %1938 = vmatprep.subr.bf16.mxu0 %v3343_v56  ;;  %1824 = vmatpush1.bf16.msra.mxu1 %v3368_v61  ;;  %v3410_v61 = vld [vmem:[#allocation4 + $0x3cc] ss:$24 sps:$4 sm:$0xff]  }
  0x97   :  { %1825 = vmatprep.subr.bf16.mxu1 %v3369_v6  ;;  %v3419_v6 = vld [vmem:[#allocation4 + $0x424] ss:$24 sps:$4 sm:$0xff]  }
  0x99   :  { %1939 = vmatpush1.bf16.msra.mxu0 %v3341_v59 }
  0x9a   :  { %1940 = vmatprep.subr.bf16.mxu0 %v3349_v60  ;;  %1826 = vmatpush1.bf16.msra.mxu1 %v3374_v9  ;;  %v3407_v60 = vld [vmem:[#allocation4 + $0x3c4] ss:$24 sps:$4 sm:$0xff]   ;;  %v3420_v9 = vld [vmem:[#allocation4 + $0x428] ss:$24 sps:$4 sm:$0xff]  }
  0x9b   :  { %1827 = vmatprep.subr.bf16.mxu1 %v3375_v10  ;;  %v3425_v10 = vld [vmem:[#allocation4 + $0x454] ss:$24 sps:$4 sm:$0xff]  }
  0x9d   :  { %1941 = vmatpush1.bf16.msra.mxu0 %v3347_v62 }
  0x9e   :  { %1942 = vmatprep.subr.bf16.mxu0 %v3355_v63  ;;  %1828 = vmatpush1.bf16.msra.mxu1 %v3380_v13  ;;  %v3405_v63 = vld [vmem:[#allocation4 + $0x3c0] ss:$24 sps:$4 sm:$0xff]  }
  0x9f   :  { %1838 = vmatprep.subr.bf16.mxu1 %v3383_v14  ;;  %v3426_v13 = vld [vmem:[#allocation4 + $0x458] ss:$24 sps:$4 sm:$0xff]   ;;  %v3431_v14 = vld [vmem:[#allocation4 + $0x484] ss:$24 sps:$4 sm:$0xff]  }
  0xa1   :  { %1943 = vmatpush1.bf16.msra.mxu0 %v3353_v1  ;;  %v3408_v1 = vld [vmem:[#allocation4 + $0x3c8] ss:$24 sps:$4 sm:$0xff]  }
  0xa2   :  { %1944 = vmatprep.subr.bf16.mxu0 %v3361_v2  ;;  %v3413_v2 = vld [vmem:[#allocation4 + $0x3f4] ss:$24 sps:$4 sm:$0xff]  }
  0xa5   :  { %1945 = vmatpush1.bf16.msra.mxu0 %v3359_v3  ;;  %v3416_v3 = vld [vmem:[#allocation4 + $0x3fc] ss:$24 sps:$4 sm:$0xff]  }
  0xa6   :  { %1946 = vmatprep.subr.bf16.mxu0 %v3367_v4  ;;  %v3411_v4 = vld [vmem:[#allocation4 + $0x3f0] ss:$24 sps:$4 sm:$0xff]  }
  0xa9   :  { %1947 = vmatpush1.bf16.msra.mxu0 %v3365_v5  ;;  %v3414_v5 = vld [vmem:[#allocation4 + $0x3f8] ss:$24 sps:$4 sm:$0xff]  }
  0xaa   :  { %1948 = vmatprep.subr.bf16.mxu0 %v3373_v7  ;;  %v3422_v7 = vld [vmem:[#allocation4 + $0x42c] ss:$24 sps:$4 sm:$0xff]  }
  0xad   :  { %1949 = vmatpush1.bf16.msra.mxu0 %v3371_v8  ;;  %v3417_v8 = vld [vmem:[#allocation4 + $0x420] ss:$24 sps:$4 sm:$0xff]  }
  0xae   :  { %1950 = vmatprep.subr.bf16.mxu0 %v3379_v11  ;;  %v3428_v11 = vld [vmem:[#allocation4 + $0x45c] ss:$24 sps:$4 sm:$0xff]  }
  0xb1   :  { %1951 = vmatpush1.bf16.msra.mxu0 %v3377_v12  ;;  %v3423_v12 = vld [vmem:[#allocation4 + $0x450] ss:$24 sps:$4 sm:$0xff]  }
  0xb2   :  { %1961 = vmatprep.subr.bf16.mxu0 %v3386_v15  ;;  %v3434_v15 = vld [vmem:[#allocation4 + $0x48c] ss:$24 sps:$4 sm:$0xff]  }
 0x137   :  { %v227_v24 = vpop.f32.mrb[0].mxu0 }
 0x138   :  { %v228_v25 = vadd.f32 %v227_v24, %v115_v22  ;;  %v229_v26 = vpop.f32.mrb[1].mxu0  ;;  %v3432_v22 = vld [vmem:[#allocation4 + $0x488] ss:$24 sps:$4 sm:$0xff]   ;;  %v3440_v24 = vld [vmem:[#allocation4 + $0x4bc] ss:$24 sps:$4 sm:$0xff]  }
 0x139   :  { %v230_v27 = vadd.f32 %v229_v26, %v119_v23  ;;  %v231_v28 = vpop.f32.mrb[2].mxu0  ;;  %v3437_v23 = vld [vmem:[#allocation4 + $0x4b4] ss:$24 sps:$4 sm:$0xff]   ;;  %v3438_v26 = vld [vmem:[#allocation4 + $0x4b8] ss:$24 sps:$4 sm:$0xff]  }
 0x13a   :  { %v315_v30 = vmax.f32 %v228_v25, 0.0  ;;  %v232_v31 = vpop.f32.mrb[3].mxu0  ;;  %v3435_v25 = vld [vmem:[#allocation4 + $0x4b0] ss:$24 sps:$4 sm:$0xff]   ;;  %v3446_v28 = vld [vmem:[#allocation4 + $0x4ec] ss:$24 sps:$4 sm:$0xff]  }
 0x13b   :  { %v316_v32 = vmax.f32 %v230_v27, 0.0  ;;  %v3443_v27 = vld [vmem:[#allocation4 + $0x4e4] ss:$24 sps:$4 sm:$0xff]   ;;  %v3444_v31 = vld [vmem:[#allocation4 + $0x4e8] ss:$24 sps:$4 sm:$0xff]  }
 0x13c   :  { %v3974_v37 = vpack.c.bf16 %v315_v30, %v315_v30  ;;  %v3441_v30 = vld [vmem:[#allocation4 + $0x4e0] ss:$24 sps:$4 sm:$0xff]  }
 0x13d   :  { %v3969_v33 = vpack.c.bf16 %v316_v32, %v316_v32  ;;  %v3449_v32 = vld [vmem:[#allocation4 + $0x514] ss:$24 sps:$4 sm:$0xff]  }
 0x13f   :  { %1829 = vmatprep.mubr.bf16.mxu1 %v3969_v33  ;;  %1952 = vmatprep.mubr.bf16.mxu0 %v3969_v33  ;;  %v3978_v40 = vpop.f32.mrb[4].mxu0 }
 0x140   :  { %1830 = vmatmul.mubr.bf16.vlgmr.msra.gmra.mrb[0].mxu1 %v3974_v37  ;;  %1953 = vmatmul.mubr.bf16.vlgmr.msra.gmra.mrb[12].mxu0 %v3974_v37  ;;  %v270_v41 = vpop.f32.mrb[5].mxu0 }
 0x141   :  { %1839 = vmatpush1.bf16.msra.mxu1 %v3381_v34  ;;  %1962 = vmatpush1.bf16.msra.mxu0 %v3384_v35  ;;  %v271_v44 = vadd.f32 %v270_v41, %v127_v36  ;;  %v272_v45 = vpop.f32.mrb[6].mxu0  ;;  %v3452_v34 = vld [vmem:[#allocation4 + $0x51c] ss:$24 sps:$4 sm:$0xff]   ;;  %v3447_v35 = vld [vmem:[#allocation4 + $0x510] ss:$24 sps:$4 sm:$0xff]   ;;  %v122_v41 = vsub.s32 2, %v3953_v18 }
 0x142   :  { %1840 = vmatprep.subr.bf16.mxu1 %v3389_v38  ;;  %1963 = vmatprep.subr.bf16.mxu0 %v3392_v39  ;;  %v273_v48 = vpop.f32.mrb[7].mxu0  ;;  %v3450_v36 = vld [vmem:[#allocation4 + $0x518] ss:$24 sps:$4 sm:$0xff]   ;;  %v3455_v38 = vld [vmem:[#allocation4 + $0x544] ss:$24 sps:$4 sm:$0xff]  }
 0x143   :  { %v318_v49 = vmax.f32 %v271_v44, 0.0  ;;  %v3458_v39 = vld [vmem:[#allocation4 + $0x54c] ss:$24 sps:$4 sm:$0xff]   ;;  %v3464_v45 = vld [vmem:[#allocation4 + $0x57c] ss:$24 sps:$4 sm:$0xff]  }
 0x144   :  { %v3461_v44 = vld [vmem:[#allocation4 + $0x574] ss:$24 sps:$4 sm:$0xff]   ;;  %v3462_v48 = vld [vmem:[#allocation4 + $0x578] ss:$24 sps:$4 sm:$0xff]  }
 0x145   :  { %1841 = vmatpush1.bf16.msra.mxu1 %v3387_v42  ;;  %1964 = vmatpush1.bf16.msra.mxu0 %v3390_v43  ;;  %v3982_v52 = vpack.c.bf16 %v318_v49, %v318_v49  ;;  %v3453_v42 = vld [vmem:[#allocation4 + $0x540] ss:$24 sps:$4 sm:$0xff]   ;;  %v3467_v49 = vld [vmem:[#allocation4 + $0x5a4] ss:$24 sps:$4 sm:$0xff]  }
 0x146   :  { %1842 = vmatprep.subr.bf16.mxu1 %v3395_v46  ;;  %1965 = vmatprep.subr.bf16.mxu0 %v3398_v47  ;;  %v3456_v43 = vld [vmem:[#allocation4 + $0x548] ss:$24 sps:$4 sm:$0xff]   ;;  %v123_v46 = vrot.slane %v3959_v20, %v122_v41 }
 0x147   :  { %1870 = vmatprep.mubr.bf16.mxu1 %v3982_v52  ;;  %1993 = vmatprep.mubr.bf16.mxu0 %v3982_v52  ;;  %v3986_v55 = vpop.f32.mrb[8].mxu0  ;;  %v3459_v47 = vld [vmem:[#allocation4 + $0x570] ss:$24 sps:$4 sm:$0xff]  }
 0x148   :  { %v3205_v56 = vpop.f32.mrb[9].mxu0 }
 0x149   :  { %1843 = vmatpush1.bf16.msra.mxu1 %v3393_v50  ;;  %1966 = vmatpush1.bf16.msra.mxu0 %v3396_v51  ;;  %v312_v59 = vpop.f32.mrb[10].mxu0  ;;  %v3470_v50 = vld [vmem:[#allocation4 + $0x5ac] ss:$24 sps:$4 sm:$0xff]   ;;  %v269_v51 = vadd.f32 %v3978_v40, %v123_v46  ;;  %v3477_v40 = vld [vmem:[#allocation4 + $0x600] ss:$24 sps:$4 sm:$0xff]  }
 0x14a   :  { %1844 = vmatprep.subr.bf16.mxu1 %v3401_v53  ;;  %1967 = vmatprep.subr.bf16.mxu0 %v3404_v54  ;;  %v3206_v62 = vpop.f32.mrb[11].mxu0  ;;  %v3465_v53 = vld [vmem:[#allocation4 + $0x5a0] ss:$24 sps:$4 sm:$0xff]   ;;  %v3473_v56 = vld [vmem:[#allocation4 + $0x5d4] ss:$24 sps:$4 sm:$0xff]  }
 0x14b   :  { %v3468_v54 = vld [vmem:[#allocation4 + $0x5a8] ss:$24 sps:$4 sm:$0xff]   ;;  %v3482_v62 = vld [vmem:[#allocation4 + $0x60c] ss:$24 sps:$4 sm:$0xff]  }
 0x14c   :  { %v3471_v59 = vld [vmem:[#allocation4 + $0x5d0] ss:$24 sps:$4 sm:$0xff]   ;;  %v3528_v46 = vld [vmem:[#allocation4 + $0x40] ss:$24 sps:$4 sm:$0xff]  }
 0x14d   :  { %1845 = vmatpush1.bf16.msra.mxu1 %v3399_v57  ;;  %1968 = vmatpush1.bf16.msra.mxu0 %v3402_v58  ;;  %v3476_v57 = vld [vmem:[#allocation4 + $0x5dc] ss:$24 sps:$4 sm:$0xff]   ;;  %v317_v58 = vmax.f32 %v269_v51, 0.0 }
 0x14e   :  { %1846 = vmatprep.subr.bf16.mxu1 %v3407_v60  ;;  %1969 = vmatprep.subr.bf16.mxu0 %v3410_v61  ;;  %v3474_v60 = vld [vmem:[#allocation4 + $0x5d8] ss:$24 sps:$4 sm:$0xff]   ;;  %v3479_v61 = vld [vmem:[#allocation4 + $0x604] ss:$24 sps:$4 sm:$0xff]   ;;  %v3539_v51 = vld [vmem:[#allocation4 + $0xd4] ss:$24 sps:$4 sm:$0xff]  }
 0x151   :  { %1847 = vmatpush1.bf16.msra.mxu1 %v3405_v63  ;;  %1970 = vmatpush1.bf16.msra.mxu0 %v3408_v1  ;;  %v3993_v63 = vpack.c.bf16 %v317_v58, %v317_v58  ;;  %v3480_v1 = vld [vmem:[#allocation4 + $0x608] ss:$24 sps:$4 sm:$0xff]   ;;  %v3548_v58 = vld [vmem:[#allocation4 + $0x164] ss:$24 sps:$4 sm:$0xff]  }
 0x152   :  { %1848 = vmatprep.subr.bf16.mxu1 %v3413_v2  ;;  %1971 = vmatprep.subr.bf16.mxu0 %v3416_v3  ;;  %v3485_v2 = vld [vmem:[#allocation4 + $0x634] ss:$24 sps:$4 sm:$0xff]  }
 0x153   :  { %v3488_v3 = vld [vmem:[#allocation4 + $0x63c] ss:$24 sps:$4 sm:$0xff]  }
 0x155   :  { %1849 = vmatpush1.bf16.msra.mxu1 %v3411_v4  ;;  %1972 = vmatpush1.bf16.msra.mxu0 %v3414_v5  ;;  %v3483_v4 = vld [vmem:[#allocation4 + $0x630] ss:$24 sps:$4 sm:$0xff]  }
 0x156   :  { %1850 = vmatprep.subr.bf16.mxu1 %v3419_v6  ;;  %1973 = vmatprep.subr.bf16.mxu0 %v3422_v7  ;;  %v3486_v5 = vld [vmem:[#allocation4 + $0x638] ss:$24 sps:$4 sm:$0xff]   ;;  %v3491_v6 = vld [vmem:[#allocation4 + $0x664] ss:$24 sps:$4 sm:$0xff]  }
 0x157   :  { %v3494_v7 = vld [vmem:[#allocation4 + $0x66c] ss:$24 sps:$4 sm:$0xff]  }
 0x159   :  { %1851 = vmatpush1.bf16.msra.mxu1 %v3417_v8  ;;  %1974 = vmatpush1.bf16.msra.mxu0 %v3420_v9  ;;  %v3489_v8 = vld [vmem:[#allocation4 + $0x660] ss:$24 sps:$4 sm:$0xff]  }
 0x15a   :  { %1852 = vmatprep.subr.bf16.mxu1 %v3425_v10  ;;  %1975 = vmatprep.subr.bf16.mxu0 %v3428_v11  ;;  %v3492_v9 = vld [vmem:[#allocation4 + $0x668] ss:$24 sps:$4 sm:$0xff]   ;;  %v3497_v10 = vld [vmem:[#allocation4 + $0x694] ss:$24 sps:$4 sm:$0xff]  }
 0x15b   :  { %v3500_v11 = vld [vmem:[#allocation4 + $0x69c] ss:$24 sps:$4 sm:$0xff]  }
 0x15d   :  { %1853 = vmatpush1.bf16.msra.mxu1 %v3423_v12  ;;  %1976 = vmatpush1.bf16.msra.mxu0 %v3426_v13  ;;  %v3495_v12 = vld [vmem:[#allocation4 + $0x690] ss:$24 sps:$4 sm:$0xff]  }
 0x15e   :  { %1854 = vmatprep.subr.bf16.mxu1 %v3431_v14  ;;  %1977 = vmatprep.subr.bf16.mxu0 %v3434_v15  ;;  %v3498_v13 = vld [vmem:[#allocation4 + $0x698] ss:$24 sps:$4 sm:$0xff]   ;;  %v3503_v14 = vld [vmem:[#allocation4 + $0x6c4] ss:$24 sps:$4 sm:$0xff]  }
 0x15f   :  { %v3506_v15 = vld [vmem:[#allocation4 + $0x6cc] ss:$24 sps:$4 sm:$0xff]  }
 0x161   :  { %1855 = vmatpush1.bf16.msra.mxu1 %v3429_v17  ;;  %1978 = vmatpush1.bf16.msra.mxu0 %v3432_v22  ;;  %v130_v17 = vsub.s32 4, %v3953_v18  ;;  %v3501_v22 = vld [vmem:[#allocation4 + $0x6c0] ss:$24 sps:$4 sm:$0xff]  }
 0x162   :  { %1856 = vmatprep.subr.bf16.mxu1 %v3437_v23  ;;  %1979 = vmatprep.subr.bf16.mxu0 %v3440_v24  ;;  %v3504_v23 = vld [vmem:[#allocation4 + $0x6c8] ss:$24 sps:$4 sm:$0xff]   ;;  %v3509_v24 = vld [vmem:[#allocation4 + $0x6f4] ss:$24 sps:$4 sm:$0xff]  }
 0x165   :  { %1857 = vmatpush1.bf16.msra.mxu1 %v3435_v25  ;;  %1980 = vmatpush1.bf16.msra.mxu0 %v3438_v26  ;;  %v3512_v25 = vld [vmem:[#allocation4 + $0x6fc] ss:$24 sps:$4 sm:$0xff]   ;;  %v131_v26 = vrot.slane %v3959_v20, %v130_v17  ;;  %v3519_v20 = vld [vmem:[#allocation4 + $0x750] ss:$24 sps:$4 sm:$0xff]  }
 0x166   :  { %1858 = vmatprep.subr.bf16.mxu1 %v3443_v27  ;;  %1981 = vmatprep.subr.bf16.mxu0 %v3446_v28  ;;  %v3507_v27 = vld [vmem:[#allocation4 + $0x6f0] ss:$24 sps:$4 sm:$0xff]  }
 0x167   :  { %v3510_v28 = vld [vmem:[#allocation4 + $0x6f8] ss:$24 sps:$4 sm:$0xff]  }
 0x169   :  { %1859 = vmatpush1.bf16.msra.mxu1 %v3441_v30  ;;  %1982 = vmatpush1.bf16.msra.mxu0 %v3444_v31  ;;  %v3515_v30 = vld [vmem:[#allocation4 + $0x724] ss:$24 sps:$4 sm:$0xff]  }
 0x16a   :  { %1860 = vmatprep.subr.bf16.mxu1 %v3449_v32  ;;  %1983 = vmatprep.subr.bf16.mxu0 %v3452_v34  ;;  %v3518_v31 = vld [vmem:[#allocation4 + $0x72c] ss:$24 sps:$4 sm:$0xff]   ;;  %v310_v32 = vadd.f32 %v3986_v55, %v131_v26  ;;  %v3513_v34 = vld [vmem:[#allocation4 + $0x720] ss:$24 sps:$4 sm:$0xff]   ;;  %v3525_v55 = vld [vmem:[#allocation4 + $0x10] ss:$24 sps:$4 sm:$0xff]  }
 0x16b   :  { %v3569_v26 = vld [vmem:[#allocation4 + $0x2b4] ss:$24 sps:$4 sm:$0xff]  }
 0x16d   :  { %1861 = vmatpush1.bf16.msra.mxu1 %v3447_v35  ;;  %1984 = vmatpush1.bf16.msra.mxu0 %v3450_v36  ;;  %v3516_v35 = vld [vmem:[#allocation4 + $0x728] ss:$24 sps:$4 sm:$0xff]   ;;  %v3521_v36 = vld [vmem:[#allocation4 + $0x754] ss:$24 sps:$4 sm:$0xff]  }
 0x16e   :  { %1862 = vmatprep.subr.bf16.mxu1 %v3455_v38  ;;  %1985 = vmatprep.subr.bf16.mxu0 %v3458_v39  ;;  %v3524_v38 = vld [vmem:[#allocation4 + $0x75c] ss:$24 sps:$4 sm:$0xff]   ;;  %v319_v39 = vmax.f32 %v310_v32, 0.0 }
 0x16f   :  { %v3575_v32 = vld [vmem:[#allocation4 + $0x314] ss:$24 sps:$4 sm:$0xff]  }
 0x171   :  { %1863 = vmatpush1.bf16.msra.mxu1 %v3453_v42  ;;  %1986 = vmatpush1.bf16.msra.mxu0 %v3456_v43  ;;  %v3522_v42 = vld [vmem:[#allocation4 + $0x758] ss:$24 sps:$4 sm:$0xff]   ;;  %v3527_v43 = vld [vmem:[#allocation4 + $0x14] ss:$24 sps:$4 sm:$0xff]  }
 0x172   :  { %1864 = vmatprep.subr.bf16.mxu1 %v3461_v44  ;;  %1987 = vmatprep.subr.bf16.mxu0 %v3464_v45  ;;  %v4004_v44 = vpack.c.bf16 %v319_v39, %v319_v39  ;;  %v3530_v45 = vld [vmem:[#allocation4 + $0x44] ss:$24 sps:$4 sm:$0xff]   ;;  %v3579_v39 = vld [vmem:[#allocation4 + $0x370] ss:$24 sps:$4 sm:$0xff]  }
 0x175   :  { %1865 = vmatpush1.bf16.msra.mxu1 %v3459_v47  ;;  %1988 = vmatpush1.bf16.msra.mxu0 %v3462_v48  ;;  %v3533_v47 = vld [vmem:[#allocation4 + $0x74] ss:$24 sps:$4 sm:$0xff]   ;;  %v3531_v48 = vld [vmem:[#allocation4 + $0x70] ss:$24 sps:$4 sm:$0xff]  }
 0x176   :  { %1866 = vmatprep.subr.bf16.mxu1 %v3467_v49  ;;  %1989 = vmatprep.subr.bf16.mxu0 %v3470_v50  ;;  %v3536_v49 = vld [vmem:[#allocation4 + $0xa4] ss:$24 sps:$4 sm:$0xff]   ;;  %v3534_v50 = vld [vmem:[#allocation4 + $0xa0] ss:$24 sps:$4 sm:$0xff]  }
 0x179   :  { %1867 = vmatpush1.bf16.msra.mxu1 %v3465_v53  ;;  %1990 = vmatpush1.bf16.msra.mxu0 %v3468_v54  ;;  %v3537_v53 = vld [vmem:[#allocation4 + $0xd0] ss:$24 sps:$4 sm:$0xff]   ;;  %v3542_v54 = vld [vmem:[#allocation4 + $0x104] ss:$24 sps:$4 sm:$0xff]  }
 0x17a   :  { %1868 = vmatprep.subr.bf16.mxu1 %v3473_v56  ;;  %1991 = vmatprep.subr.bf16.mxu0 %v3476_v57  ;;  %v3540_v56 = vld [vmem:[#allocation4 + $0x100] ss:$24 sps:$4 sm:$0xff]   ;;  %v3545_v57 = vld [vmem:[#allocation4 + $0x134] ss:$24 sps:$4 sm:$0xff]  }
 0x17d   :  { %1869 = vmatpush1.bf16.msra.mxu1 %v3471_v59  ;;  %1992 = vmatpush1.bf16.msra.mxu0 %v3474_v60  ;;  %v3546_v59 = vld [vmem:[#allocation4 + $0x160] ss:$24 sps:$4 sm:$0xff]   ;;  %v3551_v60 = vld [vmem:[#allocation4 + $0x194] ss:$24 sps:$4 sm:$0xff]  }
 0x17e   :  { %1879 = vmatprep.subr.bf16.mxu1 %v3479_v61  ;;  %2002 = vmatprep.subr.bf16.mxu0 %v3482_v62  ;;  %v3549_v61 = vld [vmem:[#allocation4 + $0x190] ss:$24 sps:$4 sm:$0xff]   ;;  %v3554_v62 = vld [vmem:[#allocation4 + $0x1c4] ss:$24 sps:$4 sm:$0xff]  }
 0x180   :  { %1871 = vmatmul.mubr.bf16.vlgmr.msra.gmra.mrb[0].mxu1 %v3993_v63  ;;  %1994 = vmatmul.mubr.bf16.vlgmr.msra.gmra.mrb[12].mxu0 %v3993_v63 }
 0x181   :  { %1880 = vmatpush1.bf16.msra.mxu1 %v3477_v40  ;;  %2003 = vmatpush1.bf16.msra.mxu0 %v3480_v1  ;;  %v3645_v40 = vld [vmem:[#allocation7 + $0x40] sm:$0xff]  }
 0x182   :  { %1881 = vmatprep.subr.bf16.mxu1 %v3485_v2  ;;  %2004 = vmatprep.subr.bf16.mxu0 %v3488_v3  ;;  %v3646_v1 = vld [vmem:[#allocation7] sm:$0xff]   ;;  %v3647_v2 = vld [vmem:[#allocation7 + $0x48] sm:$0xff]   ;;  %v3552_v3 = vld [vmem:[#allocation4 + $0x1c0] ss:$24 sps:$4 sm:$0xff]  }
 0x183   :  { %1911 = vmatprep.mubr.bf16.mxu1 %v3828_v0  ;;  %2034 = vmatprep.mubr.bf16.mxu0 %v3828_v0 }
 0x185   :  { %1882 = vmatpush1.bf16.msra.mxu1 %v3483_v4  ;;  %2005 = vmatpush1.bf16.msra.mxu0 %v3486_v5  ;;  %v3557_v4 = vld [vmem:[#allocation4 + $0x1f4] ss:$24 sps:$4 sm:$0xff]  }
 0x186   :  { %1883 = vmatprep.subr.bf16.mxu1 %v3491_v6  ;;  %2006 = vmatprep.subr.bf16.mxu0 %v3494_v7  ;;  %v3648_v5 = vld [vmem:[#allocation7 + $0x8] sm:$0xff]   ;;  %v3649_v6 = vld [vmem:[#allocation7 + $0x50] sm:$0xff]  }
 0x187   :  { %v3555_v7 = vld [vmem:[#allocation4 + $0x1f0] ss:$24 sps:$4 sm:$0xff]  }
 0x189   :  { %1884 = vmatpush1.bf16.msra.mxu1 %v3489_v8  ;;  %2007 = vmatpush1.bf16.msra.mxu0 %v3492_v9  ;;  %v3560_v8 = vld [vmem:[#allocation4 + $0x224] ss:$24 sps:$4 sm:$0xff]  }
 0x18a   :  { %1885 = vmatprep.subr.bf16.mxu1 %v3497_v10  ;;  %2008 = vmatprep.subr.bf16.mxu0 %v3500_v11  ;;  %v3650_v9 = vld [vmem:[#allocation7 + $0x10] sm:$0xff]   ;;  %v3651_v10 = vld [vmem:[#allocation7 + $0x58] sm:$0xff]  }
 0x18b   :  { %v3558_v11 = vld [vmem:[#allocation4 + $0x220] ss:$24 sps:$4 sm:$0xff]  }
 0x18d   :  { %1886 = vmatpush1.bf16.msra.mxu1 %v3495_v12  ;;  %2009 = vmatpush1.bf16.msra.mxu0 %v3498_v13  ;;  %v3563_v12 = vld [vmem:[#allocation4 + $0x254] ss:$24 sps:$4 sm:$0xff]   ;;  %v3652_v13 = vld [vmem:[#allocation7 + $0x18] sm:$0xff]  }
 0x18e   :  { %1887 = vmatprep.subr.bf16.mxu1 %v3503_v14  ;;  %2010 = vmatprep.subr.bf16.mxu0 %v3506_v15  ;;  %v3653_v14 = vld [vmem:[#allocation7 + $0x60] sm:$0xff]  }
 0x18f   :  { %v3561_v15 = vld [vmem:[#allocation4 + $0x250] ss:$24 sps:$4 sm:$0xff]  }
 0x191   :  { %1888 = vmatpush1.bf16.msra.mxu1 %v3501_v22  ;;  %2011 = vmatpush1.bf16.msra.mxu0 %v3504_v23  ;;  %v3566_v22 = vld [vmem:[#allocation4 + $0x284] ss:$24 sps:$4 sm:$0xff]  }
 0x192   :  { %1889 = vmatprep.subr.bf16.mxu1 %v3509_v24  ;;  %2012 = vmatprep.subr.bf16.mxu0 %v3512_v25  ;;  %v3654_v23 = vld [vmem:[#allocation7 + $0x20] sm:$0xff]   ;;  %v3655_v24 = vld [vmem:[#allocation7 + $0x68] sm:$0xff]   ;;  %v3564_v25 = vld [vmem:[#allocation4 + $0x280] ss:$24 sps:$4 sm:$0xff]  }
 0x195   :  { %1890 = vmatpush1.bf16.msra.mxu1 %v3507_v27  ;;  %2013 = vmatpush1.bf16.msra.mxu0 %v3510_v28  ;;  %v3656_v27 = vld [vmem:[#allocation7 + $0x28] sm:$0xff]  }
 0x196   :  { %1891 = vmatprep.subr.bf16.mxu1 %v3515_v30  ;;  %2014 = vmatprep.subr.bf16.mxu0 %v3518_v31  ;;  %v3567_v28 = vld [vmem:[#allocation4 + $0x2b0] ss:$24 sps:$4 sm:$0xff]   ;;  %v3572_v30 = vld [vmem:[#allocation4 + $0x2e4] ss:$24 sps:$4 sm:$0xff]   ;;  %v3570_v31 = vld [vmem:[#allocation4 + $0x2e0] ss:$24 sps:$4 sm:$0xff]  }
 0x199   :  { %1892 = vmatpush1.bf16.msra.mxu1 %v3513_v34  ;;  %2015 = vmatpush1.bf16.msra.mxu0 %v3516_v35  ;;  %v3573_v34 = vld [vmem:[#allocation4 + $0x310] ss:$24 sps:$4 sm:$0xff]   ;;  %v3578_v35 = vld [vmem:[#allocation4 + $0x344] ss:$24 sps:$4 sm:$0xff]  }
 0x19a   :  { %1893 = vmatprep.subr.bf16.mxu1 %v3521_v36  ;;  %2016 = vmatprep.subr.bf16.mxu0 %v3524_v38  ;;  %v3576_v36 = vld [vmem:[#allocation4 + $0x340] ss:$24 sps:$4 sm:$0xff]   ;;  %v3581_v38 = vld [vmem:[#allocation4 + $0x374] ss:$24 sps:$4 sm:$0xff]  }
 0x19d   :  { %1894 = vmatpush1.bf16.msra.mxu1 %v3519_v20  ;;  %2017 = vmatpush1.bf16.msra.mxu0 %v3522_v42  ;;  %v3584_v20 = vld [vmem:[#allocation4 + $0x3a4] ss:$24 sps:$4 sm:$0xff]   ;;  %v3582_v42 = vld [vmem:[#allocation4 + $0x3a0] ss:$24 sps:$4 sm:$0xff]  }
 0x19e   :  { %2043 = vmatprep.subr.bf16.mxu1 %v3527_v43  ;;  %3124 = vmatprep.subr.bf16.mxu0 %v3645_v40  ;;  %v3587_v43 = vld [vmem:[#allocation4 + $0x3d4] ss:$24 sps:$4 sm:$0xff]  }
 0x19f   :  { %v3611_v40 = vld [vmem:[#allocation4 + $0x554] ss:$24 sps:$4 sm:$0xff]  }
 0x1a0   :  { %1912 = vmatmul.mubr.bf16.vlgmr.msra.gmra.mrb[0].mxu1 %v4004_v44  ;;  %2035 = vmatmul.mubr.bf16.vlgmr.msra.gmra.mrb[12].mxu0 %v4004_v44 }
 0x1a1   :  { %2044 = vmatpush1.bf16.msra.mxu1 %v3525_v55  ;;  %2075 = vmatprep.mubr.bf16.mxu1 %v3969_v33  ;;  %v3543_v33 = vld [vmem:[#allocation4 + $0x130] ss:$24 sps:$4 sm:$0xff]  }
 0x1a2   :  { %2045 = vmatprep.subr.bf16.mxu1 %v3530_v45  ;;  %3125 = vmatpush3.bf16.msra.mxu0 %v3646_v1  ;;  %v3585_v55 = vld [vmem:[#allocation4 + $0x3d0] ss:$24 sps:$4 sm:$0xff]   ;;  %v3590_v45 = vld [vmem:[#allocation4 + $0x404] ss:$24 sps:$4 sm:$0xff]  }
 0x1a3   :  { %3126 = vmatprep.subr.bf16.mxu0 %v3647_v2  ;;  %v3609_v1 = vld [vmem:[#allocation4 + $0x550] ss:$24 sps:$4 sm:$0xff]   ;;  %v3614_v2 = vld [vmem:[#allocation4 + $0x584] ss:$24 sps:$4 sm:$0xff]  }
 0x1a5   :  { %2046 = vmatpush1.bf16.msra.mxu1 %v3528_v46  ;;  %v3657_v46 = vld [vmem:[#allocation7 + $0x70] sm:$0xff]  }
 0x1a6   :  { %2047 = vmatprep.subr.bf16.mxu1 %v3533_v47  ;;  %3127 = vmatpush3.bf16.msra.mxu0 %v3648_v5  ;;  %v3658_v47 = vld [vmem:[#allocation7 + $0x30] sm:$0xff]   ;;  %v3615_v5 = vld [vmem:[#allocation4 + $0x5b0] ss:$24 sps:$4 sm:$0xff]  }
 0x1a7   :  { %3128 = vmatprep.subr.bf16.mxu0 %v3649_v6  ;;  %v3620_v6 = vld [vmem:[#allocation4 + $0x5e4] ss:$24 sps:$4 sm:$0xff]  }
 0x1a9   :  { %2048 = vmatpush1.bf16.msra.mxu1 %v3531_v48  ;;  %v3591_v48 = vld [vmem:[#allocation4 + $0x430] ss:$24 sps:$4 sm:$0xff]  }
 0x1aa   :  { %2049 = vmatprep.subr.bf16.mxu1 %v3536_v49  ;;  %3129 = vmatpush3.bf16.msra.mxu0 %v3650_v9  ;;  %v3659_v49 = vld [vmem:[#allocation7 + $0x78] sm:$0xff]   ;;  %v3621_v9 = vld [vmem:[#allocation4 + $0x610] ss:$24 sps:$4 sm:$0xff]  }
 0x1ab   :  { %3130 = vmatprep.subr.bf16.mxu0 %v3651_v10  ;;  %v3626_v10 = vld [vmem:[#allocation4 + $0x644] ss:$24 sps:$4 sm:$0xff]  }
 0x1ad   :  { %2050 = vmatpush1.bf16.msra.mxu1 %v3534_v50  ;;  %v3596_v50 = vld [vmem:[#allocation4 + $0x464] ss:$24 sps:$4 sm:$0xff]  }
 0x1ae   :  { %2051 = vmatprep.subr.bf16.mxu1 %v3539_v51  ;;  %3131 = vmatpush3.bf16.msra.mxu0 %v3652_v13  ;;  %v3660_v51 = vld [vmem:[#allocation7 + $0x38] sm:$0xff]   ;;  %v3627_v13 = vld [vmem:[#allocation4 + $0x670] ss:$24 sps:$4 sm:$0xff]  }
 0x1af   :  { %3132 = vmatprep.subr.bf16.mxu0 %v3653_v14  ;;  %v3632_v14 = vld [vmem:[#allocation4 + $0x6a4] ss:$24 sps:$4 sm:$0xff]  }
 0x1b1   :  { %2052 = vmatpush1.bf16.msra.mxu1 %v3537_v53  ;;  %v3594_v53 = vld [vmem:[#allocation4 + $0x460] ss:$24 sps:$4 sm:$0xff]  }
 0x1b2   :  { %2053 = vmatprep.subr.bf16.mxu1 %v3542_v54  ;;  %3133 = vmatpush3.bf16.msra.mxu0 %v3654_v23  ;;  %v3661_v54 = vld [vmem:[#allocation7 + $0xc0] sm:$0xff]  }
 0x1b3   :  { %3134 = vmatprep.subr.bf16.mxu0 %v3655_v24  ;;  %v3633_v23 = vld [vmem:[#allocation4 + $0x6d0] ss:$24 sps:$4 sm:$0xff]   ;;  %v3638_v24 = vld [vmem:[#allocation4 + $0x704] ss:$24 sps:$4 sm:$0xff]  }
 0x1b5   :  { %2054 = vmatpush1.bf16.msra.mxu1 %v3540_v56  ;;  %v3599_v56 = vld [vmem:[#allocation4 + $0x494] ss:$24 sps:$4 sm:$0xff]  }
 0x1b6   :  { %2055 = vmatprep.subr.bf16.mxu1 %v3545_v57  ;;  %3135 = vmatpush3.bf16.msra.mxu0 %v3656_v27  ;;  %v3597_v57 = vld [vmem:[#allocation4 + $0x490] ss:$24 sps:$4 sm:$0xff]   ;;  %v3642_v27 = vld [vmem:[#allocation4 + $0x760] ss:$24 sps:$4 sm:$0xff]  }
 0x1b7   :  { %3136 = vmatprep.subr.bf16.mxu0 %v3657_v46 }
 0x1b9   :  { %2056 = vmatpush1.bf16.msra.mxu1 %v3543_v33  ;;  %v3602_v33 = vld [vmem:[#allocation4 + $0x4c4] ss:$24 sps:$4 sm:$0xff]  }
 0x1ba   :  { %2057 = vmatprep.subr.bf16.mxu1 %v3548_v58  ;;  %3137 = vmatpush3.bf16.msra.mxu0 %v3658_v47  ;;  %v3600_v58 = vld [vmem:[#allocation4 + $0x4c0] ss:$24 sps:$4 sm:$0xff]  }
 0x1bb   :  { %3138 = vmatprep.subr.bf16.mxu0 %v3659_v49 }
 0x1bd   :  { %2058 = vmatpush1.bf16.msra.mxu1 %v3546_v59  ;;  %v3605_v59 = vld [vmem:[#allocation4 + $0x4f4] ss:$24 sps:$4 sm:$0xff]  }
 0x1be   :  { %2059 = vmatprep.subr.bf16.mxu1 %v3551_v60  ;;  %3139 = vmatpush3.bf16.msra.mxu0 %v3660_v51  ;;  %v3603_v60 = vld [vmem:[#allocation4 + $0x4f0] ss:$24 sps:$4 sm:$0xff]   ;;  %v3666_v51 = vld [vmem:[#allocation7 + $0x90] sm:$0xff]  }
 0x1bf   :  { %3146 = vmatprep.subr.bf16.mxu0 %v3661_v54  ;;  %v3668_v54 = vld [vmem:[#allocation7 + $0x98] sm:$0xff]  }
 0x1c1   :  { %2060 = vmatpush1.bf16.msra.mxu1 %v3549_v61  ;;  %v3608_v61 = vld [vmem:[#allocation4 + $0x524] ss:$24 sps:$4 sm:$0xff]  }
 0x1c2   :  { %2061 = vmatprep.subr.bf16.mxu1 %v3554_v62  ;;  %v3606_v62 = vld [vmem:[#allocation4 + $0x520] ss:$24 sps:$4 sm:$0xff]  }
 0x1c5   :  { %2062 = vmatpush1.bf16.msra.mxu1 %v3552_v3  ;;  %v3612_v3 = vld [vmem:[#allocation4 + $0x580] ss:$24 sps:$4 sm:$0xff]  }
 0x1c6   :  { %2063 = vmatprep.subr.bf16.mxu1 %v3557_v4  ;;  %v3617_v4 = vld [vmem:[#allocation4 + $0x5b4] ss:$24 sps:$4 sm:$0xff]  }
 0x1c9   :  { %2064 = vmatpush1.bf16.msra.mxu1 %v3555_v7  ;;  %v3618_v7 = vld [vmem:[#allocation4 + $0x5e0] ss:$24 sps:$4 sm:$0xff]  }
 0x1ca   :  { %2065 = vmatprep.subr.bf16.mxu1 %v3560_v8  ;;  %v3623_v8 = vld [vmem:[#allocation4 + $0x614] ss:$24 sps:$4 sm:$0xff]  }
 0x1cd   :  { %2066 = vmatpush1.bf16.msra.mxu1 %v3558_v11  ;;  %v3624_v11 = vld [vmem:[#allocation4 + $0x640] ss:$24 sps:$4 sm:$0xff]  }
 0x1ce   :  { %2067 = vmatprep.subr.bf16.mxu1 %v3563_v12  ;;  %v3629_v12 = vld [vmem:[#allocation4 + $0x674] ss:$24 sps:$4 sm:$0xff]  }
 0x1d1   :  { %2068 = vmatpush1.bf16.msra.mxu1 %v3561_v15  ;;  %v3630_v15 = vld [vmem:[#allocation4 + $0x6a0] ss:$24 sps:$4 sm:$0xff]  }
 0x1d2   :  { %2069 = vmatprep.subr.bf16.mxu1 %v3566_v22  ;;  %v3635_v22 = vld [vmem:[#allocation4 + $0x6d4] ss:$24 sps:$4 sm:$0xff]  }
 0x1d5   :  { %2070 = vmatpush1.bf16.msra.mxu1 %v3564_v25  ;;  %v3641_v25 = vld [vmem:[#allocation4 + $0x734] ss:$24 sps:$4 sm:$0xff]  }
 0x1d6   :  { %2071 = vmatprep.subr.bf16.mxu1 %v3569_v26  ;;  %v3644_v26 = vld [vmem:[#allocation4 + $0x764] ss:$24 sps:$4 sm:$0xff]  }
 0x1d9   :  { %2072 = vmatpush1.bf16.msra.mxu1 %v3567_v28  ;;  %v4014_v28 = vld [vmem:[#allocation6] sm:$0x3f] }
 0x1da   :  { %2073 = vmatprep.subr.bf16.mxu1 %v3572_v30  ;;  %v570_v30 = vrot.slane %v4014_v28, %v114_v19 }
 0x1dd   :  { %2074 = vmatpush1.bf16.msra.mxu1 %v3570_v31  ;;  %v574_v31 = vrot.slane %v4014_v28, %v118_v21  ;;  %v3662_v21 = vld [vmem:[#allocation7 + $0x80] sm:$0xff]  }
 0x1de   :  { %2084 = vmatprep.subr.bf16.mxu1 %v3575_v32  ;;  %v582_v32 = vrot.slane %v4014_v28, %v126_v29  ;;  %v3664_v29 = vld [vmem:[#allocation7 + $0x88] sm:$0xff]  }
 0x1e0   :  { %2076 = vmatmul.mubr.bf16.vlgmr.msra.gmra.mrb[4].mxu1 %v3974_v37  ;;  %v3588_v37 = vld [vmem:[#allocation4 + $0x400] ss:$24 sps:$4 sm:$0xff]  }
 0x1e1   :  { %2085 = vmatpush1.bf16.msra.mxu1 %v3573_v34  ;;  %2116 = vmatprep.mubr.bf16.mxu1 %v3982_v52  ;;  %v3593_v52 = vld [vmem:[#allocation4 + $0x434] ss:$24 sps:$4 sm:$0xff]  }
 0x1e2   :  { %2086 = vmatprep.subr.bf16.mxu1 %v3578_v35 }
 0x1e5   :  { %2087 = vmatpush1.bf16.msra.mxu1 %v3576_v36 }
 0x1e6   :  { %2088 = vmatprep.subr.bf16.mxu1 %v3581_v38 }
 0x1e9   :  { %2089 = vmatpush1.bf16.msra.mxu1 %v3579_v39 }
 0x1ea   :  { %2090 = vmatprep.subr.bf16.mxu1 %v3584_v20 }
 0x1ed   :  { %2091 = vmatpush1.bf16.msra.mxu1 %v3582_v42 }
 0x1ee   :  { %2092 = vmatprep.subr.bf16.mxu1 %v3587_v43 }
 0x1f1   :  { %2093 = vmatpush1.bf16.msra.mxu1 %v3585_v55 }
 0x1f2   :  { %2094 = vmatprep.subr.bf16.mxu1 %v3590_v45 }
 0x1f5   :  { %2095 = vmatpush1.bf16.msra.mxu1 %v3588_v37 }
 0x1f6   :  { %2096 = vmatprep.subr.bf16.mxu1 %v3593_v52 }
 0x1f9   :  { %2097 = vmatpush1.bf16.msra.mxu1 %v3591_v48  ;;  %v3663_v48 = vld [vmem:[#allocation7 + $0xc8] sm:$0xff]  }
 0x1fa   :  { %2098 = vmatprep.subr.bf16.mxu1 %v3596_v50  ;;  %v3665_v50 = vld [vmem:[#allocation7 + $0xd0] sm:$0xff]  }
 0x1fd   :  { %2099 = vmatpush1.bf16.msra.mxu1 %v3594_v53  ;;  %v3667_v53 = vld [vmem:[#allocation7 + $0xd8] sm:$0xff]  }
 0x1fe   :  { %2100 = vmatprep.subr.bf16.mxu1 %v3599_v56  ;;  %v3669_v56 = vld [vmem:[#allocation7 + $0xe0] sm:$0xff]  }
 0x201   :  { %2101 = vmatpush1.bf16.msra.mxu1 %v3597_v57  ;;  %v3670_v57 = vld [vmem:[#allocation7 + $0xa0] sm:$0xff]  }
 0x202   :  { %2102 = vmatprep.subr.bf16.mxu1 %v3602_v33  ;;  %v3671_v33 = vld [vmem:[#allocation7 + $0xe8] sm:$0xff]  }
 0x205   :  { %2103 = vmatpush1.bf16.msra.mxu1 %v3600_v58  ;;  %v3672_v58 = vld [vmem:[#allocation7 + $0xa8] sm:$0xff]  }
 0x206   :  { %2104 = vmatprep.subr.bf16.mxu1 %v3605_v59  ;;  %v578_v59 = vrot.slane %v4014_v28, %v122_v41  ;;  %v3680_v41 = vld [vmem:[#allocation7 + $0x108] sm:$0xff]  }
 0x209   :  { %2105 = vmatpush1.bf16.msra.mxu1 %v3603_v60  ;;  %v3673_v60 = vld [vmem:[#allocation7 + $0xf0] sm:$0xff]  }
 0x20a   :  { %2106 = vmatprep.subr.bf16.mxu1 %v3608_v61  ;;  %v3674_v61 = vld [vmem:[#allocation7 + $0xb0] sm:$0xff]  }
 0x20d   :  { %2107 = vmatpush1.bf16.msra.mxu1 %v3606_v62 }
 0x20e   :  { %2108 = vmatprep.subr.bf16.mxu1 %v3611_v40  ;;  %v3675_v40 = vld [vmem:[#allocation7 + $0xf8] sm:$0xff]  }
 0x211   :  { %2109 = vmatpush1.bf16.msra.mxu1 %v3609_v1  ;;  %v3676_v1 = vld [vmem:[#allocation7 + $0xb8] sm:$0xff]  }
 0x212   :  { %2110 = vmatprep.subr.bf16.mxu1 %v3614_v2 }
 0x215   :  { %2111 = vmatpush1.bf16.msra.mxu1 %v3612_v3  ;;  %v3677_v3 = vld [vmem:[#allocation7 + $0x140] sm:$0xff]  }
 0x216   :  { %2112 = vmatprep.subr.bf16.mxu1 %v3617_v4  ;;  %v3678_v4 = vld [vmem:[#allocation7 + $0x100] sm:$0xff]  }
 0x219   :  { %2113 = vmatpush1.bf16.msra.mxu1 %v3615_v5 }
 0x21a   :  { %2114 = vmatprep.subr.bf16.mxu1 %v3620_v6  ;;  %v3679_v6 = vld [vmem:[#allocation7 + $0x148] sm:$0xff]  }
 0x21d   :  { %2115 = vmatpush1.bf16.msra.mxu1 %v3618_v7  ;;  %v3681_v7 = vld [vmem:[#allocation7 + $0x150] sm:$0xff]  }
 0x21e   :  { %2125 = vmatprep.subr.bf16.mxu1 %v3623_v8  ;;  %v3682_v8 = vld [vmem:[#allocation7 + $0x110] sm:$0xff]  }
 0x220   :  { %2117 = vmatmul.mubr.bf16.vlgmr.msra.gmra.mrb[4].mxu1 %v3993_v63  ;;  %v3636_v63 = vld [vmem:[#allocation4 + $0x700] ss:$24 sps:$4 sm:$0xff]  }
 0x221   :  { %2126 = vmatpush1.bf16.msra.mxu1 %v3621_v9  ;;  %2157 = vmatprep.mubr.bf16.mxu1 %v3828_v0  ;;  %v3639_v0 = vld [vmem:[#allocation4 + $0x730] ss:$24 sps:$4 sm:$0xff]   ;;  %v3683_v9 = vld [vmem:[#allocation7 + $0x158] sm:$0xff]  }
 0x222   :  { %2127 = vmatprep.subr.bf16.mxu1 %v3626_v10  ;;  %v3684_v10 = vld [vmem:[#allocation7 + $0x118] sm:$0xff]  }
 0x225   :  { %2128 = vmatpush1.bf16.msra.mxu1 %v3624_v11  ;;  %v3685_v11 = vld [vmem:[#allocation7 + $0x160] sm:$0xff]  }
 0x226   :  { %2129 = vmatprep.subr.bf16.mxu1 %v3629_v12  ;;  %v3686_v12 = vld [vmem:[#allocation7 + $0x120] sm:$0xff]  }
 0x229   :  { %2130 = vmatpush1.bf16.msra.mxu1 %v3627_v13  ;;  %v3687_v13 = vld [vmem:[#allocation7 + $0x168] sm:$0xff]  }
 0x22a   :  { %2131 = vmatprep.subr.bf16.mxu1 %v3632_v14  ;;  %v3688_v14 = vld [vmem:[#allocation7 + $0x128] sm:$0xff]  }
 0x22d   :  { %2132 = vmatpush1.bf16.msra.mxu1 %v3630_v15  ;;  %v3689_v15 = vld [vmem:[#allocation7 + $0x170] sm:$0xff]  }
 0x22e   :  { %2133 = vmatprep.subr.bf16.mxu1 %v3635_v22  ;;  %v3690_v22 = vld [vmem:[#allocation7 + $0x130] sm:$0xff]  }
 0x231   :  { %2134 = vmatpush1.bf16.msra.mxu1 %v3633_v23  ;;  %v3691_v23 = vld [vmem:[#allocation7 + $0x178] sm:$0xff]  }
 0x232   :  { %2135 = vmatprep.subr.bf16.mxu1 %v3638_v24  ;;  %v3692_v24 = vld [vmem:[#allocation7 + $0x138] sm:$0xff]  }
 0x235   :  { %2136 = vmatpush1.bf16.msra.mxu1 %v3636_v63  ;;  %v589_v63 = vsub.s32 5, %v3953_v18  ;;  %v3694_v18 = vld [vmem:[%s4080_s7 + $0x8] sm:$0xff]  }
 0x236   :  { %2137 = vmatprep.subr.bf16.mxu1 %v3641_v25  ;;  %v586_v25 = vrot.slane %v4014_v28, %v130_v17  ;;  %v3695_v17 = vld [vmem:[%s4080_s7 + $0x10] sm:$0xff]  }
 0x239   :  { %2138 = vmatpush1.bf16.msra.mxu1 %v3639_v0  ;;  %v590_v0 = vrot.slane %v4014_v28, %v589_v63  ;;  %v3696_v28 = vld [vmem:[%s4080_s7 + $0x18] sm:$0xff]  }
 0x23a   :  { %2139 = vmatprep.subr.bf16.mxu1 %v3644_v26 }
 0x23d   :  { %2140 = vmatpush1.bf16.msra.mxu1 %v3642_v27 }
 0x240   :  { %2158 = vmatmul.mubr.bf16.vlgmr.msra.gmra.mrb[4].mxu1 %v4004_v44 }
 0x273   :  { %v1913_v34 = vpop.f32.mrb[0].mxu1  ;;  %v2036_v35 = vpop.f32.mrb[12].mxu0 }
 0x274   :  { %v3227_v36 = vadd.f32 %v1913_v34, %v570_v30  ;;  %v1915_v38 = vpop.f32.mrb[1].mxu1  ;;  %v2038_v39 = vpop.f32.mrb[13].mxu0  ;;  %v3229_v62 = vadd.f32 %v2036_v35, %v578_v59 }
 0x275   :  { %v3228_v44 = vadd.f32 %v1915_v38, %v574_v31  ;;  %v3230_v20 = vadd.f32 %v2038_v39, %v582_v32  ;;  %v1917_v42 = vpop.f32.mrb[2].mxu1  ;;  %v2040_v43 = vpop.f32.mrb[14].mxu0  ;;  %v3693_v39 = vld [vmem:[%s4080_s7] sm:$0xff]  }
 0x276   :  { %v2166_v55 = vmax.f32 %v3227_v36, 0.0  ;;  %v1918_v45 = vpop.f32.mrb[3].mxu1  ;;  %v2041_v19 = vpop.f32.mrb[15].mxu0  ;;  %v2168_v2 = vmax.f32 %v3229_v62, 0.0  ;;  %v3698_v42 = vld [vmem:[%s4080_s7 + $0x28] sm:$0xff]  }
 0x277   :  { %v2167_v37 = vmax.f32 %v3228_v44, 0.0  ;;  %v2169_v46 = vmax.f32 %v3230_v20, 0.0  ;;  %v3697_v20 = vld [vmem:[%s4080_s7 + $0x20] sm:$0xff]  }
 0x278   :  { %v2172_v47 = vpack.c.bf16 %v2166_v55, %v2166_v55  ;;  %v2174_v5 = vpack.c.bf16 %v2168_v2, %v2168_v2  ;;  %v3112_v62 = vld [vmem:[%s4081_s8] ss:$0 sm:$0xff] }
 0x279   :  { %v2173_v52 = vpack.c.bf16 %v2167_v37, %v2167_v37  ;;  %v2175_v49 = vpack.c.bf16 %v2169_v46, %v2169_v46  ;;  %v3063_v46 = vld [vmem:[#allocation9] ss:$0 sm:$0xff] }
 0x27b   :  { %2601 = vmatprep.mubr.bf16.mxu0 %v2173_v52 }
 0x27c   :  { %2602 = vmatmul.mubr.bf16.vlgmr.msra.gmra.mrb[16].mxu0 %v2172_v47 }
 0x27d   :  { %3147 = vmatpush3.bf16.msra.mxu0 %v3662_v21  ;;  %2641 = vmatprep.mubr.bf16.mxu0 %v2175_v49 }
 0x27e   :  { %3148 = vmatprep.subr.bf16.mxu0 %v3663_v48 }
 0x281   :  { %3149 = vmatpush3.bf16.msra.mxu0 %v3664_v29  ;;  %v3699_v29 = vld [vmem:[%s4080_s7 + $0x30] sm:$0xff]  }
 0x282   :  { %3150 = vmatprep.subr.bf16.mxu0 %v3665_v50 }
 0x285   :  { %3151 = vmatpush3.bf16.msra.mxu0 %v3666_v51 }
 0x286   :  { %3152 = vmatprep.subr.bf16.mxu0 %v3667_v53  ;;  %v3700_v53 = vld [vmem:[%s4080_s7 + $0x38] sm:$0xff]  }
 0x289   :  { %3153 = vmatpush3.bf16.msra.mxu0 %v3668_v54 }
 0x28a   :  { %3154 = vmatprep.subr.bf16.mxu0 %v3669_v56 }
 0x28d   :  { %3155 = vmatpush3.bf16.msra.mxu0 %v3670_v57 }
 0x28e   :  { %3156 = vmatprep.subr.bf16.mxu0 %v3671_v33 }
 0x291   :  { %3157 = vmatpush3.bf16.msra.mxu0 %v3672_v58 }
 0x292   :  { %3158 = vmatprep.subr.bf16.mxu0 %v3673_v60 }
 0x295   :  { %3159 = vmatpush3.bf16.msra.mxu0 %v3674_v61 }
 0x296   :  { %3160 = vmatprep.subr.bf16.mxu0 %v3675_v40 }
 0x299   :  { %3161 = vmatpush3.bf16.msra.mxu0 %v3676_v1 }
 0x29a   :  { %3168 = vmatprep.subr.bf16.mxu0 %v3677_v3 }
 0x29c   :  { %2642 = vmatmul.mubr.bf16.vlgmr.msra.gmra.mrb[20].mxu0 %v2174_v5 }
 0x29d   :  { %3169 = vmatpush3.bf16.msra.mxu0 %v3678_v4 }
 0x29e   :  { %3170 = vmatprep.subr.bf16.mxu0 %v3679_v6 }
 0x2a1   :  { %3171 = vmatpush3.bf16.msra.mxu0 %v3680_v41 }
 0x2a2   :  { %3172 = vmatprep.subr.bf16.mxu0 %v3681_v7 }
 0x2a5   :  { %3173 = vmatpush3.bf16.msra.mxu0 %v3682_v8 }
 0x2a6   :  { %3174 = vmatprep.subr.bf16.mxu0 %v3683_v9 }
 0x2a9   :  { %3175 = vmatpush3.bf16.msra.mxu0 %v3684_v10 }
 0x2aa   :  { %3176 = vmatprep.subr.bf16.mxu0 %v3685_v11 }
 0x2ad   :  { %3177 = vmatpush3.bf16.msra.mxu0 %v3686_v12 }
 0x2ae   :  { %3178 = vmatprep.subr.bf16.mxu0 %v3687_v13 }
 0x2b1   :  { %3179 = vmatpush3.bf16.msra.mxu0 %v3688_v14 }
 0x2b2   :  { %3180 = vmatprep.subr.bf16.mxu0 %v3689_v15 }
 0x2b5   :  { %3181 = vmatpush3.bf16.msra.mxu0 %v3690_v22 }
 0x2b6   :  { %3182 = vmatprep.subr.bf16.mxu0 %v3691_v23 }
 0x2b9   :  { %3183 = vmatpush3.bf16.msra.mxu0 %v3692_v24 }
 0x2ba   :  { %3207 = vmatprep.subr.bf16.mxu0 %v3829_v16 }
 0x313   :  { %v2159_v26 = vpop.f32.mrb[4].mxu1 }
 0x314   :  { %v3231_v27 = vadd.f32 %v2159_v26, %v586_v25  ;;  %v2161_v30 = vpop.f32.mrb[5].mxu1 }
 0x315   :  { %v3232_v31 = vadd.f32 %v2161_v30, %v590_v0  ;;  %v2163_v32 = vpop.f32.mrb[6].mxu1 }
 0x316   :  { %v2170_v34 = vmax.f32 %v3231_v27, 0.0  ;;  %v2164_v35 = vpop.f32.mrb[7].mxu1 }
 0x317   :  { %v2171_v36 = vmax.f32 %v3232_v31, 0.0 }
 0x318   :  { %v2176_v44 = vpack.c.bf16 %v2170_v34, %v2170_v34 }
 0x319   :  { %v2177_v38 = vpack.c.bf16 %v2171_v36, %v2171_v36 }
 0x31b   :  { %2681 = vmatprep.mubr.bf16.mxu0 %v2177_v38 }
 0x31c   :  { %2682 = vmatmul.mubr.bf16.vlgmr.msra.gmra.mrb[24].mxu0 %v2176_v44 }
 0x31d   :  { %3208 = vmatpush3.bf16.msra.mxu0 %v3693_v39  ;;  %3223 = vmatprep.mubr.msk.bf16.mxu0 %vm3830_vm1, %v3829_v16 }
 0x31e   :  { %3209 = vmatprep.subr.bf16.mxu0 %v3829_v16 }
 0x321   :  { %3210 = vmatpush3.bf16.msra.mxu0 %v3694_v18 }
 0x322   :  { %3211 = vmatprep.subr.bf16.mxu0 %v3829_v16 }
 0x325   :  { %3212 = vmatpush3.bf16.msra.mxu0 %v3695_v17 }
 0x326   :  { %3213 = vmatprep.subr.bf16.mxu0 %v3829_v16 }
 0x329   :  { %3214 = vmatpush3.bf16.msra.mxu0 %v3696_v28 }
 0x32a   :  { %3215 = vmatprep.subr.bf16.mxu0 %v3829_v16 }
 0x32d   :  { %3216 = vmatpush3.bf16.msra.mxu0 %v3697_v20 }
 0x32e   :  { %3217 = vmatprep.subr.bf16.mxu0 %v3829_v16 }
 0x331   :  { %3218 = vmatpush3.bf16.msra.mxu0 %v3698_v42 }
 0x332   :  { %3219 = vmatprep.subr.bf16.mxu0 %v3829_v16 }
 0x335   :  { %3220 = vmatpush3.bf16.msra.mxu0 %v3699_v29 }
 0x336   :  { %3221 = vmatprep.subr.bf16.mxu0 %v3829_v16 }
 0x339   :  { %3222 = vmatpush3.bf16.msra.mxu0 %v3700_v53 }
 0x34f   :  { %v3140_v43 = vpop.f32.mrb[16].mxu0 }
 0x350   :  { %v3141_v55 = vpop.f32.mrb[17].mxu0 }
 0x351   :  { %v3142_v45 = vadd.f32 %v3141_v55, %v3140_v43  ;;  %v3143_v19 = vpop.f32.mrb[18].mxu0 }
 0x352   :  { %v3144_v37 = vpop.f32.mrb[19].mxu0 }
 0x353   :  { %v2604_v47 = vadd.f32 %v3142_v45, %v3063_v46 }
 0x36f   :  { %v3162_v52 = vpop.f32.mrb[20].mxu0 }
 0x370   :  { %v3163_v21 = vpop.f32.mrb[21].mxu0 }
 0x371   :  { %v3164_v48 = vadd.f32 %v3163_v21, %v3162_v52  ;;  %v3165_v49 = vpop.f32.mrb[22].mxu0 }
 0x372   :  { %v3166_v50 = vpop.f32.mrb[23].mxu0 }
 0x373   :  { %v2644_v51 = vadd.f32 %v3164_v48, %v2604_v47 }
 0x3ef   :  { %v3184_v54 = vpop.f32.mrb[24].mxu0 }
 0x3f0   :  { %v3185_v56 = vpop.f32.mrb[25].mxu0 }
 0x3f1   :  { %v3186_v57 = vadd.f32 %v3185_v56, %v3184_v54  ;;  %v3187_v33 = vpop.f32.mrb[26].mxu0 }
 0x3f2   :  { %v3188_v58 = vpop.f32.mrb[27].mxu0 }
 0x3f3   :  { %v2684_v59 = vadd.f32 %v3186_v57, %v2644_v51 }
 0x3f5   :  { %v2689_v60 = vmax.f32 %v2684_v59, 0.0 }
 0x3f7   :  { %v2690_v61 = vpack.c.bf16 %v2689_v60, %v2689_v60 }
 0x3f9   :  { %3224 = vmatmul.mubr.bf16.vlgmr.msra.gmra.mrb[28].mxu0 %v2690_v61 }
 0x4cc   :  { %v2796_v40 = vpop.f32.mrb[28].mxu0 }
 0x4cd   :  { %v2797_v16 = vadd.f32 %v3112_v62, %v2796_v40  ;;  %v3225_v1 = vpop.f32.mrb[29].mxu0 }
 0x4ce   :  { %v2799_v2 = vpop.f32.mrb[30].mxu0 }
 0x4cf   :  { %2802 = vst [vmem:[%s4082_s9] sm:$0xff] %v2797_v16  ;;  %v3226_v3 = vpop.f32.mrb[31].mxu0 }
 0x4d0   :  { %2807 = vsyncpa [#allocation3], 1 }
 0x4d1   :  { %2808 = vsyncpa [#allocation5], 1 }
 0x4d2   :  { %2809 = vsyncpa [#allocation8], 1 }

</bundles_post_ra>
